<compile_context>
chip_gen: v7x
topology: tpu7x:2x2x1
jax: 0.10.0
libtpu: 0.0.40
codegen_flags: <defaults>
</compile_context>

<pallas_src>
from functools import partial

import jax
import jax.numpy as jnp
from jax.experimental import pallas as pl
from jax.experimental.pallas import tpu as pltpu


def dwcon_kernel(x_ref, dww_ref, pww_ref, beff_ref, gam_ref, bet_ref,
                 gmat_ref, o_ref, *, H, W, eps):
    # x_ref:    (1, H+2, W+2, Cin)  spatially pre-padded NHWC tile (one batch el.)
    # dww_ref:  (9, Cin)            depthwise taps, channel on lanes
    # pww_ref:  (Cin, Cout)         pointwise weight, pre-transposed
    # beff_ref: (1, Cout)           combined conv bias  (pw @ dw_b + pw_b)
    # gam_ref:  (1, Cout)           GroupNorm gamma
    # bet_ref:  (1, Cout)           GroupNorm beta
    # gmat_ref: (Cout, Cout)        block-diagonal group-averaging matrix
    # o_ref:    (1, H, W, Cout)
    Cin = x_ref.shape[-1]
    Cout = o_ref.shape[-1]

    xp = x_ref[0].astype(jnp.float32)                     # (H+2, W+2, Cin)
    w_all = dww_ref[...].astype(jnp.float32)              # (9, Cin)

    # ---- Depthwise 3x3 conv (no bias; folded into b_eff): 9 shifted MACs ----
    acc = jnp.zeros((H, W, Cin), jnp.float32)
    for k in range(9):                                     # static unroll
        dy, dx = k // 3, k % 3
        tap = xp[dy:dy + H, dx:dx + W, :]                  # (H, W, Cin)
        wk = w_all[k:k + 1, :].reshape(1, 1, Cin)
        acc = acc + tap * wk

    # ---- Pointwise 1x1 conv: one MXU matmul (weights already (Cin, Cout)) ----
    z = jnp.dot(acc.reshape(H * W, Cin),
                pww_ref[...].astype(jnp.float32),
                preferred_element_type=jnp.float32)        # (H*W, Cout), bias-free

    # ---- GroupNorm(4, Cout) with bias folded into the statistics ----
    # y = z + b.  Per-channel spatial moments of z, corrected for b, then
    # averaged within groups via a tiny block-diagonal matmul.
    inv_n = 1.0 / float(H * W)
    b = beff_ref[...].astype(jnp.float32)                  # (1, Cout)
    m1 = jnp.sum(z, axis=0, keepdims=True) * inv_n         # E_sp[z]   per channel
    m2 = jnp.sum(z * z, axis=0, keepdims=True) * inv_n     # E_sp[z^2] per channel
    a = m1 + b                                             # E_sp[y]   per channel
    d = m2 + 2.0 * b * m1 + b * b                          # E_sp[y^2] per channel

    gmat = gmat_ref[...]
    mu = jnp.dot(a, gmat, preferred_element_type=jnp.float32)   # group mean / ch
    q = jnp.dot(d, gmat, preferred_element_type=jnp.float32)    # group E[y^2] / ch
    var = q - mu * mu
    rstd = jax.lax.rsqrt(var + eps)

    # Fold bias + normalization + affine into per-channel scale/shift:
    #   out = (y - mu) * rstd * gamma + beta = z*scale + shift
    scale = gam_ref[...].astype(jnp.float32) * rstd             # (1, Cout)
    shift = scale * (b - mu) + bet_ref[...].astype(jnp.float32)  # (1, Cout)

    out = jnp.maximum(z * scale + shift, 0.0)              # fused norm + ReLU
    o_ref[...] = out.reshape(1, H, W, Cout).astype(o_ref.dtype)


def dwcon(x, dw_w, dw_b, pw_w, pw_b, gamma, beta, *, groups=4, eps=1e-5):
    """x: (B, Cin, H, W) NCHW.  Weights in PyTorch layouts:
       dw_w (Cin,1,3,3), dw_b (Cin,), pw_w (Cout,Cin,1,1), pw_b (Cout,),
       gamma/beta (Cout,).  Returns (B, Cout, H, W)."""
    B, Cin, H, W = x.shape
    Cout = pw_w.shape[0]
    assert Cout % groups == 0
    Cg = Cout // groups

    # Layout plumbing + constant folding (done once in XLA, outside the grid):
    x_nhwc = jnp.transpose(x, (0, 2, 3, 1))                # (B, H, W, Cin)
    x_pad = jnp.pad(x_nhwc, ((0, 0), (1, 1), (1, 1), (0, 0)))
    dww = jnp.transpose(dw_w.reshape(Cin, 9), (1, 0))      # (9, Cin): tap-major
    pw_mat = pw_w.reshape(Cout, Cin)
    pww = jnp.transpose(pw_mat, (1, 0))                    # (Cin, Cout): no in-kernel .T
    b_eff = (pw_mat.astype(jnp.float32) @ dw_b.astype(jnp.float32)
             + pw_b.astype(jnp.float32)).reshape(1, Cout)  # combined conv bias
    gidx = jnp.arange(Cout) // Cg
    gmat = (gidx[:, None] == gidx[None, :]).astype(jnp.float32) / float(Cg)

    kernel = partial(dwcon_kernel, H=H, W=W, eps=eps)
    out_nhwc = pl.pallas_call(
        kernel,
        out_shape=jax.ShapeDtypeStruct((B, H, W, Cout), x.dtype),
        grid_spec=pltpu.PrefetchScalarGridSpec(
            num_scalar_prefetch=0,
            grid=(B,),
            in_specs=[
                pl.BlockSpec((1, H + 2, W + 2, Cin), lambda b: (b, 0, 0, 0)),
                pl.BlockSpec((9, Cin), lambda b: (0, 0)),
                pl.BlockSpec((Cin, Cout), lambda b: (0, 0)),
                pl.BlockSpec((1, Cout), lambda b: (0, 0)),
                pl.BlockSpec((1, Cout), lambda b: (0, 0)),
                pl.BlockSpec((1, Cout), lambda b: (0, 0)),
                pl.BlockSpec((Cout, Cout), lambda b: (0, 0)),
            ],
            out_specs=pl.BlockSpec((1, H, W, Cout), lambda b: (b, 0, 0, 0)),
        ),
        compiler_params=pltpu.CompilerParams(
            dimension_semantics=("parallel",)),
    )(x_pad, dww, pww, b_eff, gamma.reshape(1, Cout), beta.reshape(1, Cout),
      gmat)

    return jnp.transpose(out_nhwc, (0, 3, 1, 2))           # back to NCHW


def dwcon_ref(x, dw_w, dw_b, pw_w, pw_b, gamma, beta, *, groups=4, eps=1e-5):
    """Pure-JAX reference matching the PyTorch forward."""
    B, Cin, H, W = x.shape
    Cout = pw_w.shape[0]
    y = jax.lax.conv_general_dilated(
        x, dw_w, window_strides=(1, 1), padding=((1, 1), (1, 1)),
        dimension_numbers=("NCHW", "OIHW", "NCHW"),
        feature_group_count=Cin)
    y = y + dw_b[None, :, None, None]
    z = jax.lax.conv_general_dilated(
        y, pw_w, window_strides=(1, 1), padding="VALID",
        dimension_numbers=("NCHW", "OIHW", "NCHW"))
    z = z + pw_b[None, :, None, None]
    zg = z.reshape(B, groups, Cout // groups, H, W)
    mean = zg.mean(axis=(2, 3, 4), keepdims=True)
    var = zg.var(axis=(2, 3, 4), keepdims=True)
    zn = ((zg - mean) / jnp.sqrt(var + eps)).reshape(B, Cout, H, W)
    zn = zn * gamma[None, :, None, None] + beta[None, :, None, None]
    return jnp.maximum(zn, 0.0)


if __name__ == "__main__":
    B, Cin, Cout, H, W = 2, 8, 16, 16, 16
    groups = 4

    key = jax.random.PRNGKey(0)
    kx, k1, k2, k3, k4 = jax.random.split(key, 5)

    x = jax.random.normal(kx, (B, Cin, H, W), dtype=jnp.float32)

    # Conv2d default (Kaiming-uniform-ish) init, PyTorch weight layouts.
    bound_dw = 1.0 / (1 * 3 * 3) ** 0.5          # depthwise fan_in = 1*3*3
    dw_w = jax.random.uniform(k1, (Cin, 1, 3, 3), jnp.float32, -bound_dw, bound_dw)
    dw_b = jax.random.uniform(k2, (Cin,), jnp.float32, -bound_dw, bound_dw)
    bound_pw = 1.0 / (Cin * 1 * 1) ** 0.5        # pointwise fan_in = Cin
    pw_w = jax.random.uniform(k3, (Cout, Cin, 1, 1), jnp.float32, -bound_pw, bound_pw)
    pw_b = jax.random.uniform(k4, (Cout,), jnp.float32, -bound_pw, bound_pw)
    # GroupNorm default affine params.
    gamma = jnp.ones((Cout,), jnp.float32)
    beta = jnp.zeros((Cout,), jnp.float32)

    out = dwcon(x, dw_w, dw_b, pw_w, pw_b, gamma, beta, groups=groups)
    out = jax.block_until_ready(out)

    ref = dwcon_ref(x, dw_w, dw_b, pw_w, pw_b, gamma, beta, groups=groups)
    assert out.shape == (B, Cout, H, W), out.shape
    assert jnp.allclose(out, ref, atol=2e-4, rtol=2e-4), \
        float(jnp.max(jnp.abs(out - ref)))

    print("KERNEL_OK")
</pallas_src>

<mosaic_0001>
module attributes {stable_mosaic.version = 11 : i64} {
  func.func @dwcon_kernel(%arg0: i32, %arg1: memref<1x18x18x8xf32, #tpu.memory_space<vmem>>, %arg2: memref<9x8xf32, #tpu.memory_space<vmem>>, %arg3: memref<8x16xf32, #tpu.memory_space<vmem>>, %arg4: memref<1x16xf32, #tpu.memory_space<vmem>>, %arg5: memref<1x16xf32, #tpu.memory_space<vmem>>, %arg6: memref<1x16xf32, #tpu.memory_space<vmem>>, %arg7: memref<16x16xf32, #tpu.memory_space<vmem>>, %arg8: memref<1x16x16x16xf32, #tpu.memory_space<vmem>>) attributes {dimension_semantics = [#tpu.dimension_semantics<parallel>], iteration_bounds = array<i64: 2>, scalar_prefetch = 0 : i64, scratch_operands = 0 : i64, tpu.core_type = #tpu.core_type<tc>, window_params = [{transform_indices = @transform_0, window_bounds = array<i64: 1, 18, 18, 8>}, {pipeline_mode = #tpu.pipeline_mode<synchronous>, transform_indices = @transform_1, window_bounds = array<i64: 9, 8>}, {pipeline_mode = #tpu.pipeline_mode<synchronous>, transform_indices = @transform_2, window_bounds = array<i64: 8, 16>}, {pipeline_mode = #tpu.pipeline_mode<synchronous>, transform_indices = @transform_3, window_bounds = array<i64: 1, 16>}, {pipeline_mode = #tpu.pipeline_mode<synchronous>, transform_indices = @transform_4, window_bounds = array<i64: 1, 16>}, {pipeline_mode = #tpu.pipeline_mode<synchronous>, transform_indices = @transform_5, window_bounds = array<i64: 1, 16>}, {pipeline_mode = #tpu.pipeline_mode<synchronous>, transform_indices = @transform_6, window_bounds = array<i64: 16, 16>}, {transform_indices = @transform_7, window_bounds = array<i64: 1, 16, 16, 16>}]} {
    %c0 = arith.constant 0 : index
    %c0_0 = arith.constant 0 : index
    %c0_1 = arith.constant 0 : index
    %c0_2 = arith.constant 0 : index
    %0 = vector.load %arg1[%c0, %c0_0, %c0_1, %c0_2] : memref<1x18x18x8xf32, #tpu.memory_space<vmem>>, vector<1x18x18x8xf32>
    %1 = vector.shape_cast %0 : vector<1x18x18x8xf32> to vector<18x18x8xf32>
    %c0_3 = arith.constant 0 : index
    %c0_4 = arith.constant 0 : index
    %2 = vector.load %arg2[%c0_3, %c0_4] : memref<9x8xf32, #tpu.memory_space<vmem>>, vector<9x8xf32>
    %cst = arith.constant 0.000000e+00 : f32
    %3 = vector.broadcast %cst : f32 to vector<16x16x8xf32>
    %4 = vector.extract_strided_slice %1 {offsets = [0, 0, 0], sizes = [16, 16, 8], strides = [1, 1, 1]} : vector<18x18x8xf32> to vector<16x16x8xf32>
    %5 = vector.extract_strided_slice %2 {offsets = [0, 0], sizes = [1, 8], strides = [1, 1]} : vector<9x8xf32> to vector<1x8xf32>
    %6 = vector.shape_cast %5 : vector<1x8xf32> to vector<1x1x8xf32>
    %7 = vector.broadcast %6 : vector<1x1x8xf32> to vector<16x16x8xf32>
    %8 = arith.mulf %4, %7 : vector<16x16x8xf32>
    %9 = arith.addf %3, %8 : vector<16x16x8xf32>
    %10 = vector.extract_strided_slice %1 {offsets = [0, 1, 0], sizes = [16, 16, 8], strides = [1, 1, 1]} : vector<18x18x8xf32> to vector<16x16x8xf32>
    %11 = vector.extract_strided_slice %2 {offsets = [1, 0], sizes = [1, 8], strides = [1, 1]} : vector<9x8xf32> to vector<1x8xf32>
    %12 = vector.shape_cast %11 : vector<1x8xf32> to vector<1x1x8xf32>
    %13 = vector.broadcast %12 : vector<1x1x8xf32> to vector<16x16x8xf32>
    %14 = arith.mulf %10, %13 : vector<16x16x8xf32>
    %15 = arith.addf %9, %14 : vector<16x16x8xf32>
    %16 = vector.extract_strided_slice %1 {offsets = [0, 2, 0], sizes = [16, 16, 8], strides = [1, 1, 1]} : vector<18x18x8xf32> to vector<16x16x8xf32>
    %17 = vector.extract_strided_slice %2 {offsets = [2, 0], sizes = [1, 8], strides = [1, 1]} : vector<9x8xf32> to vector<1x8xf32>
    %18 = vector.shape_cast %17 : vector<1x8xf32> to vector<1x1x8xf32>
    %19 = vector.broadcast %18 : vector<1x1x8xf32> to vector<16x16x8xf32>
    %20 = arith.mulf %16, %19 : vector<16x16x8xf32>
    %21 = arith.addf %15, %20 : vector<16x16x8xf32>
    %22 = vector.extract_strided_slice %1 {offsets = [1, 0, 0], sizes = [16, 16, 8], strides = [1, 1, 1]} : vector<18x18x8xf32> to vector<16x16x8xf32>
    %23 = vector.extract_strided_slice %2 {offsets = [3, 0], sizes = [1, 8], strides = [1, 1]} : vector<9x8xf32> to vector<1x8xf32>
    %24 = vector.shape_cast %23 : vector<1x8xf32> to vector<1x1x8xf32>
    %25 = vector.broadcast %24 : vector<1x1x8xf32> to vector<16x16x8xf32>
    %26 = arith.mulf %22, %25 : vector<16x16x8xf32>
    %27 = arith.addf %21, %26 : vector<16x16x8xf32>
    %28 = vector.extract_strided_slice %1 {offsets = [1, 1, 0], sizes = [16, 16, 8], strides = [1, 1, 1]} : vector<18x18x8xf32> to vector<16x16x8xf32>
    %29 = vector.extract_strided_slice %2 {offsets = [4, 0], sizes = [1, 8], strides = [1, 1]} : vector<9x8xf32> to vector<1x8xf32>
    %30 = vector.shape_cast %29 : vector<1x8xf32> to vector<1x1x8xf32>
    %31 = vector.broadcast %30 : vector<1x1x8xf32> to vector<16x16x8xf32>
    %32 = arith.mulf %28, %31 : vector<16x16x8xf32>
    %33 = arith.addf %27, %32 : vector<16x16x8xf32>
    %34 = vector.extract_strided_slice %1 {offsets = [1, 2, 0], sizes = [16, 16, 8], strides = [1, 1, 1]} : vector<18x18x8xf32> to vector<16x16x8xf32>
    %35 = vector.extract_strided_slice %2 {offsets = [5, 0], sizes = [1, 8], strides = [1, 1]} : vector<9x8xf32> to vector<1x8xf32>
    %36 = vector.shape_cast %35 : vector<1x8xf32> to vector<1x1x8xf32>
    %37 = vector.broadcast %36 : vector<1x1x8xf32> to vector<16x16x8xf32>
    %38 = arith.mulf %34, %37 : vector<16x16x8xf32>
    %39 = arith.addf %33, %38 : vector<16x16x8xf32>
    %40 = vector.extract_strided_slice %1 {offsets = [2, 0, 0], sizes = [16, 16, 8], strides = [1, 1, 1]} : vector<18x18x8xf32> to vector<16x16x8xf32>
    %41 = vector.extract_strided_slice %2 {offsets = [6, 0], sizes = [1, 8], strides = [1, 1]} : vector<9x8xf32> to vector<1x8xf32>
    %42 = vector.shape_cast %41 : vector<1x8xf32> to vector<1x1x8xf32>
    %43 = vector.broadcast %42 : vector<1x1x8xf32> to vector<16x16x8xf32>
    %44 = arith.mulf %40, %43 : vector<16x16x8xf32>
    %45 = arith.addf %39, %44 : vector<16x16x8xf32>
    %46 = vector.extract_strided_slice %1 {offsets = [2, 1, 0], sizes = [16, 16, 8], strides = [1, 1, 1]} : vector<18x18x8xf32> to vector<16x16x8xf32>
    %47 = vector.extract_strided_slice %2 {offsets = [7, 0], sizes = [1, 8], strides = [1, 1]} : vector<9x8xf32> to vector<1x8xf32>
    %48 = vector.shape_cast %47 : vector<1x8xf32> to vector<1x1x8xf32>
    %49 = vector.broadcast %48 : vector<1x1x8xf32> to vector<16x16x8xf32>
    %50 = arith.mulf %46, %49 : vector<16x16x8xf32>
    %51 = arith.addf %45, %50 : vector<16x16x8xf32>
    %52 = vector.extract_strided_slice %1 {offsets = [2, 2, 0], sizes = [16, 16, 8], strides = [1, 1, 1]} : vector<18x18x8xf32> to vector<16x16x8xf32>
    %53 = vector.extract_strided_slice %2 {offsets = [8, 0], sizes = [1, 8], strides = [1, 1]} : vector<9x8xf32> to vector<1x8xf32>
    %54 = vector.shape_cast %53 : vector<1x8xf32> to vector<1x1x8xf32>
    %55 = vector.broadcast %54 : vector<1x1x8xf32> to vector<16x16x8xf32>
    %56 = arith.mulf %52, %55 : vector<16x16x8xf32>
    %57 = arith.addf %51, %56 : vector<16x16x8xf32>
    %58 = vector.shape_cast %57 : vector<16x16x8xf32> to vector<256x8xf32>
    %c0_5 = arith.constant 0 : index
    %c0_6 = arith.constant 0 : index
    %59 = vector.load %arg3[%c0_5, %c0_6] : memref<8x16xf32, #tpu.memory_space<vmem>>, vector<8x16xf32>
    %cst_7 = arith.constant dense<0.000000e+00> : vector<256x16xf32>
    %60 = tpu.matmul %58, %59, %cst_7 {dimension_numbers = #tpu.dot_dimension_numbers<[1], [0], [0], [1], [0, 0, 1, 1], [], []>} : vector<256x8xf32>, vector<8x16xf32>, vector<256x16xf32> -> vector<256x16xf32>
    %c0_8 = arith.constant 0 : index
    %c0_9 = arith.constant 0 : index
    %61 = vector.load %arg4[%c0_8, %c0_9] : memref<1x16xf32, #tpu.memory_space<vmem>>, vector<1x16xf32>
    %cst_10 = arith.constant dense<0.000000e+00> : vector<16xf32>
    %62 = vector.multi_reduction <add>, %60, %cst_10 [0] : vector<256x16xf32> to vector<16xf32>
    %63 = vector.shape_cast %62 : vector<16xf32> to vector<1x16xf32>
    %cst_11 = arith.constant 3.906250e-03 : f32
    %64 = vector.broadcast %cst_11 : f32 to vector<1x16xf32>
    %65 = arith.mulf %63, %64 : vector<1x16xf32>
    %66 = arith.mulf %60, %60 : vector<256x16xf32>
    %cst_12 = arith.constant dense<0.000000e+00> : vector<16xf32>
    %67 = vector.multi_reduction <add>, %66, %cst_12 [0] : vector<256x16xf32> to vector<16xf32>
    %68 = vector.shape_cast %67 : vector<16xf32> to vector<1x16xf32>
    %cst_13 = arith.constant 3.906250e-03 : f32
    %69 = vector.broadcast %cst_13 : f32 to vector<1x16xf32>
    %70 = arith.mulf %68, %69 : vector<1x16xf32>
    %71 = arith.addf %65, %61 : vector<1x16xf32>
    %cst_14 = arith.constant 2.000000e+00 : f32
    %72 = vector.broadcast %cst_14 : f32 to vector<1x16xf32>
    %73 = arith.mulf %72, %61 : vector<1x16xf32>
    %74 = arith.mulf %73, %65 : vector<1x16xf32>
    %75 = arith.addf %70, %74 : vector<1x16xf32>
    %76 = arith.mulf %61, %61 : vector<1x16xf32>
    %77 = arith.addf %75, %76 : vector<1x16xf32>
    %c0_15 = arith.constant 0 : index
    %c0_16 = arith.constant 0 : index
    %78 = vector.load %arg7[%c0_15, %c0_16] : memref<16x16xf32, #tpu.memory_space<vmem>>, vector<16x16xf32>
    %cst_17 = arith.constant dense<0.000000e+00> : vector<1x16xf32>
    %79 = tpu.matmul %71, %78, %cst_17 {dimension_numbers = #tpu.dot_dimension_numbers<[1], [0], [0], [1], [0, 0, 1, 1], [], []>} : vector<1x16xf32>, vector<16x16xf32>, vector<1x16xf32> -> vector<1x16xf32>
    %cst_18 = arith.constant dense<0.000000e+00> : vector<1x16xf32>
    %80 = tpu.matmul %77, %78, %cst_18 {dimension_numbers = #tpu.dot_dimension_numbers<[1], [0], [0], [1], [0, 0, 1, 1], [], []>} : vector<1x16xf32>, vector<16x16xf32>, vector<1x16xf32> -> vector<1x16xf32>
    %81 = arith.mulf %79, %79 : vector<1x16xf32>
    %82 = arith.subf %80, %81 : vector<1x16xf32>
    %cst_19 = arith.constant 9.99999974E-6 : f32
    %83 = vector.broadcast %cst_19 : f32 to vector<1x16xf32>
    %84 = arith.addf %82, %83 : vector<1x16xf32>
    %85 = math.rsqrt %84 : vector<1x16xf32>
    %c0_20 = arith.constant 0 : index
    %c0_21 = arith.constant 0 : index
    %86 = vector.load %arg5[%c0_20, %c0_21] : memref<1x16xf32, #tpu.memory_space<vmem>>, vector<1x16xf32>
    %87 = arith.mulf %86, %85 : vector<1x16xf32>
    %88 = arith.subf %61, %79 : vector<1x16xf32>
    %89 = arith.mulf %87, %88 : vector<1x16xf32>
    %c0_22 = arith.constant 0 : index
    %c0_23 = arith.constant 0 : index
    %90 = vector.load %arg6[%c0_22, %c0_23] : memref<1x16xf32, #tpu.memory_space<vmem>>, vector<1x16xf32>
    %91 = arith.addf %89, %90 : vector<1x16xf32>
    %92 = vector.broadcast %87 : vector<1x16xf32> to vector<256x16xf32>
    %93 = arith.mulf %60, %92 : vector<256x16xf32>
    %94 = vector.broadcast %91 : vector<1x16xf32> to vector<256x16xf32>
    %95 = arith.addf %93, %94 : vector<256x16xf32>
    %cst_24 = arith.constant 0.000000e+00 : f32
    %96 = vector.broadcast %cst_24 : f32 to vector<256x16xf32>
    %97 = arith.maximumf %95, %96 : vector<256x16xf32>
    %98 = vector.shape_cast %97 : vector<256x16xf32> to vector<1x16x16x16xf32>
    %c0_25 = arith.constant 0 : index
    %c0_26 = arith.constant 0 : index
    %c0_27 = arith.constant 0 : index
    %c0_28 = arith.constant 0 : index
    %99 = vector.load %arg8[%c0_25, %c0_26, %c0_27, %c0_28] : memref<1x16x16x16xf32, #tpu.memory_space<vmem>>, vector<1x16x16x16xf32>
    tpu.vector_store %arg8[%c0_25, %c0_26, %c0_27, %c0_28], %98 {strides = array<i32>} : memref<1x16x16x16xf32, #tpu.memory_space<vmem>>, vector<1x16x16x16xf32>,
    return
  }
  func.func @transform_0(%arg0: i32) -> (i32, i32, i32, i32) {
    %c0_i32 = arith.constant 0 : i32
    %c0_i32_0 = arith.constant 0 : i32
    %c0_i32_1 = arith.constant 0 : i32
    %c0_i32_2 = arith.constant 0 : i32
    return %arg0, %c0_i32, %c0_i32_0, %c0_i32_1 : i32, i32, i32, i32
  }
  func.func @transform_1(%arg0: i32) -> (i32, i32) {
    %c0_i32 = arith.constant 0 : i32
    %c0_i32_0 = arith.constant 0 : i32
    %c0_i32_1 = arith.constant 0 : i32
    return %c0_i32, %c0_i32_0 : i32, i32
  }
  func.func @transform_2(%arg0: i32) -> (i32, i32) {
    %c0_i32 = arith.constant 0 : i32
    %c0_i32_0 = arith.constant 0 : i32
    %c0_i32_1 = arith.constant 0 : i32
    return %c0_i32, %c0_i32_0 : i32, i32
  }
  func.func @transform_3(%arg0: i32) -> (i32, i32) {
    %c0_i32 = arith.constant 0 : i32
    %c0_i32_0 = arith.constant 0 : i32
    %c0_i32_1 = arith.constant 0 : i32
    return %c0_i32, %c0_i32_0 : i32, i32
  }
  func.func @transform_4(%arg0: i32) -> (i32, i32) {
    %c0_i32 = arith.constant 0 : i32
    %c0_i32_0 = arith.constant 0 : i32
    %c0_i32_1 = arith.constant 0 : i32
    return %c0_i32, %c0_i32_0 : i32, i32
  }
  func.func @transform_5(%arg0: i32) -> (i32, i32) {
    %c0_i32 = arith.constant 0 : i32
    %c0_i32_0 = arith.constant 0 : i32
    %c0_i32_1 = arith.constant 0 : i32
    return %c0_i32, %c0_i32_0 : i32, i32
  }
  func.func @transform_6(%arg0: i32) -> (i32, i32) {
    %c0_i32 = arith.constant 0 : i32
    %c0_i32_0 = arith.constant 0 : i32
    %c0_i32_1 = arith.constant 0 : i32
    return %c0_i32, %c0_i32_0 : i32, i32
  }
  func.func @transform_7(%arg0: i32) -> (i32, i32, i32, i32) {
    %c0_i32 = arith.constant 0 : i32
    %c0_i32_0 = arith.constant 0 : i32
    %c0_i32_1 = arith.constant 0 : i32
    %c0_i32_2 = arith.constant 0 : i32
    return %arg0, %c0_i32, %c0_i32_0, %c0_i32_1 : i32, i32, i32, i32
  }
}

</mosaic_0001>

<bundles_post_ra>
// kernel: tpu_custom_call.1
= control target key start
LH: loop header
LB: loop body
LE: loop exit
PB: predicated region body
PF: predicated region fallthrough
CT: control target
= control target key end

     0   :  { %12 = vsyncpa [#allocation3], 0  ;;  %s5013_s0 = inlined_call_operand.vmem [shape: f32[2,18,18,8], index: 0, kind: input, shape index: {}]   ;;  %s5014_s1 = inlined_call_operand.vmem [shape: f32[9,8], index: 1, kind: input, shape index: {}]   ;;  %s5015_s2 = inlined_call_operand.vmem [shape: f32[8,16], index: 2, kind: input, shape index: {}]   ;;  %s5016_s3 = inlined_call_operand.vmem [shape: f32[1,16], index: 3, kind: input, shape index: {}]   ;;  %s5017_s4 = inlined_call_operand.vmem [shape: f32[1,16], index: 4, kind: input, shape index: {}]   ;;  %s5018_s5 = inlined_call_operand.vmem [shape: f32[1,16], index: 5, kind: input, shape index: {}]   ;;  %s5019_s6 = inlined_call_operand.vmem [shape: f32[16,16], index: 6, kind: input, shape index: {}]   ;;  %s5020_s7 = inlined_call_operand.hbm [shape: f32[2,16,16,16], index: 7, kind: output, shape index: {}]  }
   0x1   :  { %14 = vsyncpa [#allocation3 + $0x1], 0  ;;  %s3197_s24 = smov 0   ;;  %s3199_s25 = smov 0  }
   0x2   :  { %s3201_s26 = smov 0   ;;  %s3203_s27 = smov 0  }
   0x3 LB: > { %s3218_s28 = sadd.s32 4294967295, %s3149_s27   ;;  %s2880_s29 = sadd.s32 4294967294, %s3149_s27   ;;  %s3149_s27 = sphi %s3203_s27, %s5026_s27   ;;  %s3145_s26 = sphi %s3201_s26, %s5025_s26   ;;  %s3141_s25 = sphi %s3199_s25, %s5024_s25   ;;  %s3137_s24 = sphi %s3197_s24, %s5023_s24  }
   0x4   : > { %s3222_s30 = sadd.s32 1, %s3149_s27   ;;  %s179_s8 = sadd.s32 1, %s3145_s26 }
   0x5   : > { %s176_s9 = ssub.s32 %s3149_s27, %s3222_s30  ;;  %p189_p0 = scmp.ne.s32.totalorder %s3145_s26, %s3141_s25 }
   0x6   : > { %p177_p1 = scmp.eq.s32.totalorder %s176_s9, 0  ;;  %p190_p2 = scmp.eq.s32.totalorder %s3218_s28, 1 }
   0x7   : > { %p195_p3 = scmp.ne.s32.totalorder %s3141_s25, %s3137_s24  ;;  %p196_p4 = scmp.eq.s32.totalorder %s2880_s29, 1 }
   0x8   : > { %s3233_s10 = scalar_select %p177_p1, %s3145_s26, %s179_s8  }
   0x9   : > { %p3235_p5 = por %p190_p2, %p189_p0  ;;  %p3239_p6 = por %p196_p4, %p195_p3 }
   0xa   : > { %p2883_p7 = scmp.ge.s32.totalorder %s3149_s27, 1  ;;  %p240_p8 = scmp.lt.s32.totalorder %s3149_s27, 3 }
   0xc   : > { %p241_p9 = pnand %p2883_p7, %p240_p8 }
   0xd   : > { %v2003_v0 = vld [vmem:[%s5015_s2] sm:$0xff] (!%p241_p9)  ;;  %p272_p10 = scmp.lt.s32.totalorder (!%p241_p9), %s3218_s28, 1  ;;  %v333_v1 = vlaneseq (!%p241_p9)  ;;  %vm501_vm0 = vcmask (!%p241_p9), 1046528   ;;  %vm746_vm1 = vcmask (!%p241_p9), 1045504   ;;  %v3302_v36 = vld [vmem:[%s5014_s1 + $0x8] ss:$0 sm:$0xff] (!%p241_p9) }
   0xe   : > { %244 = sbr.rel (%p241_p9) target bundleno = 835 (0x343), region = 48  ;;  %2966 = vmatprep.subr.mxu0 (!%p241_p9), %v2003_v0  ;;  %3036 = vmatprep.subr.mxu1 (!%p241_p9), %v2003_v0  ;;  %v331_v3 = vld [vmem:[%s5014_s1] sm:$0xff] (!%p241_p9)  ;;  %vm2004_vm2 = vcmask (!%p241_p9), 64512   ;;  %vm2327_vm3 = vcmask (!%p241_p9), 130048   ;;  %vm3152_vm4 = vmmov (!%p241_p9), 0   ;;  %s269_s29 = sand.u32 (!%p241_p9), 1, %s3141_s25  }
   0xf   : > { %2967 = vmatpush3.msra.mxu0 (!%p241_p9), %v2003_v0  ;;  %v334_v2 = vshrl.u32 (!%p241_p9), %v333_v1, 7  ;;  %3037 = vmatpush3.msra.mxu1 (!%p241_p9), %v2003_v0  ;;  %s2884_s8 = sshll.u32 (!%p241_p9), %s269_s29, 8  ;;  %s2926_s13 = sshll.u32 (!%p241_p9), %s3218_s28, 12 }
  0x10   : > { %s4881_s9 = scalar_lea.vmem (!%p241_p9), [#allocation2], %s2884_s8  ;;  %s4944_s16 = scalar_lea.hbm (!%p241_p9), %s5020_s7, %s2926_s13 }
  0x11   : > { %v3253_v4 = vsub.s32 (!%p241_p9), 0, %v334_v2  ;;  %v403_v5 = vsub.s32 (!%p241_p9), 1, %v334_v2  ;;  %v648_v6 = vsub.s32 (!%p241_p9), 2, %v334_v2  ;;  %v893_v7 = vsub.s32 (!%p241_p9), 3, %v334_v2  ;;  %s2818_s14 = sshll.u32 (!%p241_p9), %s4881_s9, 4  ;;  %s4972_s17 = scalar_lea.sflag (!%p241_p9), [#allocation3], %s269_s29  ;;  %s4946_s14 = int_to_ptr.vmem [resolvable:$true] %s2818_s14 }
  0x12   : > { %v961_v8 = vsub.s32 (!%p241_p9), 4, %v334_v2  ;;  %v1205_v9 = vsub.s32 (!%p241_p9), 5, %v334_v2  ;;  %v1449_v10 = vsub.s32 (!%p241_p9), 6, %v334_v2  ;;  %v1517_v11 = vsub.s32 (!%p241_p9), 7, %v334_v2  ;;  %s3154_s19 = smov (!%p241_p9), [#allocation2]  }
  0x13   : > { %v3261_v12 = vrot.slane (!%p241_p9), %v331_v3, %v3253_v4  ;;  %v3263_v13 = vrot.slane (!%p241_p9), %v331_v3, %v403_v5  ;;  %v3265_v14 = vrot.slane (!%p241_p9), %v331_v3, %v648_v6  ;;  %v3269_v17 = vrot.slane (!%p241_p9), %v331_v3, %v893_v7  ;;  %s3091_s20 = sshll.u32 (!%p241_p9), %s3154_s19, 4  ;;  %s3092_s20 = int_to_ptr.vmem [resolvable:$false] %s3091_s20 }
  0x14   : > { %v3271_v18 = vrot.slane (!%p241_p9), %v331_v3, %v961_v8  ;;  %v3273_v19 = vrot.slane (!%p241_p9), %v331_v3, %v1205_v9  ;;  %v3275_v20 = vrot.slane (!%p241_p9), %v331_v3, %v1449_v10  ;;  %v3286_v26 = vrot.slane (!%p241_p9), %v331_v3, %v1517_v11  ;;  %p3094_p0 = scmp.lt.s32.totalorder (!%p241_p9), %s4946_s14, %s3092_s20 }
  0x15   : > { %s273_s15 = scalar_select %p272_p10, %s3218_s28, 1 }
  0x17   : > { %s3038_s18 = smul.u32 432, %s273_s15 }
  0x19   : > { %s3258_s21 = scalar_lea.vmem %s5013_s0, %s3038_s18  ;;  %s3087_s18 = scalar_lea.vmem %s4946_s14, 4096 }
  0x1a   : > { %v277_v15 = vld [vmem:[%s3258_s21] sm:$0xff]  ;;  %v278_v16 = vld [vmem:[%s3258_s21 + $0x8] sm:$0xff]  ;;  %v3278_v21 = vld [vmem:[%s3258_s21 + $0x18] sm:$0xff]  ;;  %p3088_p11 = scmp.ne.s32.totalorder %s4946_s14, %s3087_s18 }
  0x1b   : > { %v3281_v22 = vld [vmem:[%s3258_s21 + $0x20] sm:$0xff]  ;;  %v405_v23 = vmul.f32 %v3263_v13, %v277_v15  ;;  %v406_v24 = vmul.f32 %v3263_v13, %v278_v16  ;;  %v650_v25 = vmul.f32 %v3265_v14, %v277_v15  ;;  %v337_v27 = vmul.f32 %v3261_v12, %v277_v15  ;;  %v3297_v35 = vld [vmem:[%s3258_s21 + $0x30] sm:$0xff]  ;;  %v3313_v46 = vld [vmem:[%s3258_s21 + $0x38] sm:$0xff] }
  0x1c   : > { %v651_v28 = vmul.f32 %v3265_v14, %v278_v16  ;;  %v963_v29 = vmul.f32 %v3271_v18, %v3278_v21  ;;  %v964_v30 = vmul.f32 %v3271_v18, %v3281_v22  ;;  %v1207_v34 = vmul.f32 %v3273_v19, %v3278_v21  ;;  %v279_v45 = vld [vmem:[%s3258_s21 + $0x10] sm:$0x3]  ;;  %v3331_v62 = vld [vmem:[%s3258_s21 + $0x28] sm:$0x3]  ;;  %v3344_v11 = vld [vmem:[%s3258_s21 + $0x40] sm:$0x3]  ;;  %p3089_p12 = pnand %p3088_p11, %p3235_p5 }
  0x1d   : > { %v502_v31 = vrot.slane %v405_v23, 1  ;;  %v503_v32 = vrot.slane %v406_v24, 1  ;;  %v747_v33 = vrot.slane %v650_v25, 2  ;;  %v1208_v40 = vmul.f32 %v3273_v19, %v3281_v22 }
  0x1e   : > { %v748_v37 = vrot.slane %v651_v28, 2  ;;  %v1059_v38 = vrot.slane %v963_v29, 1  ;;  %v1060_v39 = vrot.slane %v964_v30, 1  ;;  %v895_v42 = vmul.f32 %v3269_v17, %v3278_v21  ;;  %p3090_p13 = pneg %p3089_p12 }
  0x1f   : > { %v504_v41 = vsel %vm501_vm0, %v502_v31, %v503_v32  ;;  %v1303_v43 = vrot.slane %v1207_v34, 2  ;;  %v1519_v44 = vmul.f32 %v3286_v26, %v3297_v35  ;;  %v1304_v49 = vrot.slane %v1208_v40, 2 }
  0x20   : > { %v614_v47 = vadd.f32 %v504_v41, %v337_v27  ;;  %v749_v48 = vsel %vm746_vm1, %v747_v33, %v748_v37  ;;  %v1451_v50 = vmul.f32 %v3275_v20, %v3297_v35  ;;  %v1520_v51 = vmul.f32 %v3286_v26, %v3313_v46 }
  0x21   : > { %v1615_v52 = vrot.slane %v1519_v44, 1  ;;  %v1763_v53 = vmul.f32 %v3302_v36, %v3297_v35  ;;  %v3324_v54 = vmul.f32 %v3302_v36, %v3313_v46  ;;  %v1061_v56 = vsel %vm501_vm0, %v1059_v38, %v1060_v39 }
  0x22   : > { %v859_v55 = vadd.f32 %v749_v48, %v614_v47  ;;  %v338_v57 = vmul.f32 %v3261_v12, %v278_v16  ;;  %v407_v58 = vmul.f32 %v3263_v13, %v279_v45  ;;  %v1616_v59 = vrot.slane %v1520_v51, 1 }
  0x23   : > { %v1859_v60 = vrot.slane %v1763_v53, 2  ;;  %v1860_v61 = vrot.slane %v3324_v54, 2  ;;  %v652_v63 = vmul.f32 %v3265_v14, %v279_v45  ;;  %v1305_v1 = vsel %vm746_vm1, %v1303_v43, %v1304_v49 }
  0x24   : > { %v927_v0 = vadd.f32 %v895_v42, %v859_v55  ;;  %v505_v2 = vrot.slane %v407_v58, 1  ;;  %v965_v3 = vmul.f32 %v3271_v18, %v3331_v62  ;;  %v1617_v5 = vsel %vm501_vm0, %v1615_v52, %v1616_v59 }
  0x25   : > { %v750_v6 = vrot.slane %v652_v63, 2  ;;  %v896_v7 = vmul.f32 %v3269_v17, %v3281_v22  ;;  %v1209_v8 = vmul.f32 %v3273_v19, %v3331_v62  ;;  %v1861_v10 = vsel %vm746_vm1, %v1859_v60, %v1860_v61 }
  0x26   : > { %v1171_v9 = vadd.f32 %v1061_v56, %v927_v0  ;;  %v506_v15 = vsel %vm501_vm0, %v503_v32, %v505_v2  ;;  %v1062_v16 = vrot.slane %v965_v3, 1  ;;  %v1521_v27 = vmul.f32 %v3286_v26, %v3344_v11  ;;  %v3389_v2 = vld [vmem:[%s3258_s21 + $0x50] sm:$0xff] }
  0x27   : > { %v615_v23 = vadd.f32 %v506_v15, %v338_v57  ;;  %v751_v24 = vsel %vm746_vm1, %v748_v37, %v750_v6  ;;  %v1306_v25 = vrot.slane %v1209_v8, 2  ;;  %v1452_v30 = vmul.f32 %v3275_v20, %v3313_v46 }
  0x28   : > { %v1415_v28 = vadd.f32 %v1305_v1, %v1171_v9  ;;  %v1063_v29 = vsel %vm501_vm0, %v1060_v39, %v1062_v16  ;;  %v1765_v31 = vmul.f32 %v3302_v36, %v3344_v11  ;;  %v1618_v34 = vrot.slane %v1521_v27, 1  ;;  %v3386_v1 = vld [vmem:[%s3258_s21 + $0x48] sm:$0xff] }
  0x29   : > { %v860_v33 = vadd.f32 %v751_v24, %v615_v23  ;;  %v339_v32 = vmul.f32 %v3261_v12, %v3278_v21  ;;  %v408_v37 = vmul.f32 %v3263_v13, %v3278_v21  ;;  %v1307_v40 = vsel %vm746_vm1, %v1304_v49, %v1306_v25 }
  0x2a   : > { %v1483_v38 = vadd.f32 %v1451_v50, %v1415_v28  ;;  %v3362_v39 = vmul.f32 %v3263_v13, %v3281_v22  ;;  %v653_v41 = vmul.f32 %v3265_v14, %v3278_v21  ;;  %v1862_v43 = vrot.slane %v1765_v31, 2 }
  0x2b   : > { %v928_v42 = vadd.f32 %v896_v7, %v860_v33  ;;  %v507_v44 = vrot.slane %v408_v37, 1  ;;  %v3368_v45 = vmul.f32 %v3265_v14, %v3281_v22  ;;  %v1619_v48 = vsel %vm501_vm0, %v1616_v59, %v1618_v34 }
  0x2c   : > { %v1727_v47 = vadd.f32 %v1617_v5, %v1483_v38  ;;  %v508_v50 = vrot.slane %v3362_v39, 1  ;;  %v752_v49 = vrot.slane %v653_v41, 2  ;;  %v897_v21 = vmul.f32 %v3269_v17, %v3297_v35 }
  0x2d   : > { %v1172_v51 = vadd.f32 %v1063_v29, %v928_v42  ;;  %v753_v52 = vrot.slane %v3368_v45, 2  ;;  %v966_v53 = vmul.f32 %v3271_v18, %v3297_v35  ;;  %v967_v56 = vmul.f32 %v3271_v18, %v3313_v46 }
  0x2e   : > { %v1971_v54 = vadd.f32 %v1861_v10, %v1727_v47  ;;  %v509_v55 = vsel %vm501_vm0, %v507_v44, %v508_v50  ;;  %v1210_v57 = vmul.f32 %v3273_v19, %v3297_v35  ;;  %v1863_v0 = vsel %vm746_vm1, %v1860_v61, %v1862_v43  ;;  %v3422_v44 = vld [vmem:[%s3258_s21 + $0x58] sm:$0x3] }
  0x2f   : > { %v1416_v58 = vadd.f32 %v1307_v40, %v1172_v51  ;;  %v616_v59 = vadd.f32 %v509_v55, %v339_v32  ;;  %v754_v60 = vsel %vm746_vm1, %v752_v49, %v753_v52  ;;  %v1064_v63 = vrot.slane %v966_v53, 1 }
  0x30   : > { %2968 = vmatprep.mubr.msk.f32.mxu0 %vm2004_vm2, %v1971_v54  ;;  %v1065_v3 = vrot.slane %v967_v56, 1  ;;  %v1211_v5 = vmul.f32 %v3273_v19, %v3313_v46  ;;  %v1308_v6 = vrot.slane %v1210_v57, 2  ;;  %v1522_v9 = vmul.f32 %v3286_v26, %v3386_v1 }
  0x31   : > { %v1484_v7 = vadd.f32 %v1452_v30, %v1416_v58  ;;  %v861_v8 = vadd.f32 %v754_v60, %v616_v59  ;;  %v1523_v10 = vmul.f32 %v3286_v26, %v3389_v2  ;;  %v1766_v16 = vmul.f32 %v3302_v36, %v3386_v1 }
  0x32   : > { %v1066_v15 = vsel %vm501_vm0, %v1064_v63, %v1065_v3  ;;  %v1309_v61 = vrot.slane %v1211_v5, 2  ;;  %v3402_v23 = vmul.f32 %v3302_v36, %v3389_v2  ;;  %v1620_v27 = vrot.slane %v1522_v9, 1 }
  0x33   : > { %v1728_v24 = vadd.f32 %v1619_v48, %v1484_v7  ;;  %v929_v25 = vadd.f32 %v897_v21, %v861_v8  ;;  %v1621_v28 = vrot.slane %v1523_v10, 1  ;;  %v1864_v30 = vrot.slane %v1766_v16, 2 }
  0x34   : > { %v1310_v29 = vsel %vm746_vm1, %v1308_v6, %v1309_v61  ;;  %v1865_v31 = vrot.slane %v3402_v23, 2  ;;  %v1453_v32 = vmul.f32 %v3275_v20, %v3386_v1  ;;  %v410_v37 = vmul.f32 %v3263_v13, %v3331_v62 }
  0x35   : > { %v1972_v33 = vadd.f32 %v1863_v0, %v1728_v24  ;;  %v1173_v34 = vadd.f32 %v1066_v15, %v929_v25  ;;  %v1622_v38 = vsel %vm501_vm0, %v1620_v27, %v1621_v28  ;;  %v340_v40 = vmul.f32 %v3261_v12, %v3281_v22 }
  0x36   : > { %v655_v39 = vmul.f32 %v3265_v14, %v3331_v62  ;;  %v968_v41 = vmul.f32 %v3271_v18, %v3344_v11  ;;  %v1866_v43 = vsel %vm746_vm1, %v1864_v30, %v1865_v31  ;;  %v510_v45 = vrot.slane %v410_v37, 1 }
  0x37   : > { %2969 = vmatmul.mubr.msk.f32.vlgmr.msra.gmra.mrb[0].mxu0 %vm2004_vm2, %v1972_v33  ;;  %v1417_v42 = vadd.f32 %v1310_v29, %v1173_v34  ;;  %v1212_v47 = vmul.f32 %v3273_v19, %v3344_v11  ;;  %v898_v62 = vmul.f32 %v3269_v17, %v3313_v46  ;;  %v1524_v49 = vmul.f32 %v3286_v26, %v3422_v44  ;;  %v3462_v34 = vld [vmem:[%s3258_s21 + $0x60] sm:$0xff] }
  0x38   : > { %v755_v22 = vrot.slane %v655_v39, 2  ;;  %v1067_v48 = vrot.slane %v968_v41, 1  ;;  %v511_v21 = vsel %vm501_vm0, %v508_v50, %v510_v45  ;;  %v1768_v54 = vmul.f32 %v3302_v36, %v3422_v44  ;;  %v3466_v41 = vld [vmem:[%s3258_s21 + $0x68] sm:$0xff] }
  0x39   : > { %v1485_v51 = vadd.f32 %v1453_v32, %v1417_v42  ;;  %v1311_v53 = vrot.slane %v1212_v47, 2  ;;  %v617_v55 = vadd.f32 %v511_v21, %v340_v40  ;;  %v1454_v57 = vmul.f32 %v3275_v20, %v3389_v2 }
  0x3a   : > { %v756_v56 = vsel %vm746_vm1, %v753_v52, %v755_v22  ;;  %v1623_v58 = vrot.slane %v1524_v49, 1  ;;  %v1068_v60 = vsel %vm501_vm0, %v1065_v3, %v1067_v48  ;;  %v341_v63 = vmul.f32 %v3261_v12, %v3297_v35 }
  0x3b   : > { %v1729_v59 = vadd.f32 %v1622_v38, %v1485_v51  ;;  %v411_v50 = vmul.f32 %v3263_v13, %v3297_v35  ;;  %v862_v0 = vadd.f32 %v756_v56, %v617_v55  ;;  %v1312_v5 = vsel %vm746_vm1, %v1309_v61, %v1311_v53 }
  0x3c   : > { %v412_v6 = vmul.f32 %v3263_v13, %v3313_v46  ;;  %v656_v52 = vmul.f32 %v3265_v14, %v3297_v35  ;;  %v1867_v8 = vrot.slane %v1768_v54, 2  ;;  %v657_v3 = vmul.f32 %v3265_v14, %v3313_v46 }
  0x3d   : > { %v1973_v7 = vadd.f32 %v1866_v43, %v1729_v59  ;;  %v512_v9 = vrot.slane %v411_v50, 1  ;;  %v930_v10 = vadd.f32 %v898_v62, %v862_v0  ;;  %v1624_v15 = vsel %vm501_vm0, %v1621_v28, %v1623_v58 }
  0x3e   : > { %v513_v16 = vrot.slane %v412_v6, 1  ;;  %v757_v24 = vrot.slane %v656_v52, 2  ;;  %v758_v61 = vrot.slane %v657_v3, 2  ;;  %v969_v25 = vmul.f32 %v3271_v18, %v3386_v1 }
  0x3f   : > { %2971 = vmatprep.mubr.msk.f32.mxu0 %vm2004_vm2, %v1973_v7  ;;  %v970_v35 = vmul.f32 %v3271_v18, %v3389_v2  ;;  %v1213_v27 = vmul.f32 %v3273_v19, %v3386_v1  ;;  %v1174_v29 = vadd.f32 %v1068_v60, %v930_v10  ;;  %v899_v28 = vmul.f32 %v3269_v17, %v3386_v1 }
  0x40   : > { %v514_v30 = vsel %vm501_vm0, %v512_v9, %v513_v16  ;;  %v1214_v33 = vmul.f32 %v3273_v19, %v3389_v2  ;;  %v759_v37 = vsel %vm746_vm1, %v757_v24, %v758_v61  ;;  %v1069_v38 = vrot.slane %v969_v25, 1  ;;  %v3499_v9 = vld [vmem:[%s3258_s21 + $0x70] sm:$0x3] }
  0x41   : > { %v618_v32 = vadd.f32 %v514_v30, %v341_v63  ;;  %v1070_v40 = vrot.slane %v970_v35, 1  ;;  %v1418_v39 = vadd.f32 %v1312_v5, %v1174_v29  ;;  %v1313_v42 = vrot.slane %v1213_v27, 2 }
  0x42   : > { %v1314_v43 = vrot.slane %v1214_v33, 2  ;;  %v1525_v45 = vmul.f32 %v3286_v26, %v3462_v34  ;;  %v1868_v47 = vsel %vm746_vm1, %v1865_v31, %v1867_v8  ;;  %v3475_v62 = vmul.f32 %v3286_v26, %v3466_v41 }
  0x43   : > { %v863_v22 = vadd.f32 %v759_v37, %v618_v32  ;;  %v1769_v48 = vmul.f32 %v3302_v36, %v3462_v34  ;;  %v1486_v49 = vadd.f32 %v1454_v57, %v1418_v39  ;;  %v1071_v51 = vsel %vm501_vm0, %v1069_v38, %v1070_v40 }
  0x44   : > { %v1625_v21 = vrot.slane %v1525_v45, 1  ;;  %v3482_v53 = vmul.f32 %v3302_v36, %v3466_v41  ;;  %v1315_v23 = vsel %vm746_vm1, %v1313_v42, %v1314_v43  ;;  %v1455_v31 = vmul.f32 %v3275_v20, %v3462_v34 }
  0x45   : > { %v931_v54 = vadd.f32 %v899_v28, %v863_v22  ;;  %v1626_v55 = vrot.slane %v3475_v62, 1  ;;  %v1730_v56 = vadd.f32 %v1624_v15, %v1486_v49  ;;  %v1869_v58 = vrot.slane %v1769_v48, 2 }
  0x46   : > { %v413_v57 = vmul.f32 %v3263_v13, %v3344_v11  ;;  %v658_v59 = vmul.f32 %v3265_v14, %v3344_v11  ;;  %v1870_v63 = vrot.slane %v3482_v53, 2  ;;  %v342_v50 = vmul.f32 %v3261_v12, %v3313_v46 }
  0x47   : > { %v1175_v60 = vadd.f32 %v1071_v51, %v931_v54  ;;  %v971_v0 = vmul.f32 %v3271_v18, %v3422_v44  ;;  %v1974_v5 = vadd.f32 %v1868_v47, %v1730_v56  ;;  %v1627_v6 = vsel %vm501_vm0, %v1625_v21, %v1626_v55 }
  0x48   : > { %v515_v52 = vrot.slane %v413_v57, 1  ;;  %v760_v7 = vrot.slane %v658_v59, 2  ;;  %v900_v11 = vmul.f32 %v3269_v17, %v3389_v2  ;;  %v1215_v10 = vmul.f32 %v3273_v19, %v3422_v44 }
  0x49   : > { %v1419_v8 = vadd.f32 %v1315_v23, %v1175_v60  ;;  %v1072_v3 = vrot.slane %v971_v0, 1  ;;  %2972 = vmatmul.mubr.msk.f32.gmra.mrb[2].mxu0 %vm2004_vm2, %v1974_v5  ;;  %v1527_v24 = vmul.f32 %v3286_v26, %v3499_v9  ;;  %v1771_v25 = vmul.f32 %v3302_v36, %v3499_v9  ;;  %v3546_v5 = vld [vmem:[%s3258_s21 + $0x78] sm:$0xff] }
  0x4a   : > { %v516_v46 = vsel %vm501_vm0, %v513_v16, %v515_v52  ;;  %v761_v15 = vsel %vm746_vm1, %v758_v61, %v760_v7  ;;  %v1871_v27 = vsel %vm746_vm1, %v1869_v58, %v1870_v63  ;;  %v1316_v30 = vrot.slane %v1215_v10, 2  ;;  %v3550_v7 = vld [vmem:[%s3258_s21 + $0x80] sm:$0xff] }
  0x4b   : > { %v1487_v35 = vadd.f32 %v1455_v31, %v1419_v8  ;;  %v619_v29 = vadd.f32 %v516_v46, %v342_v50  ;;  %v1073_v28 = vsel %vm501_vm0, %v1070_v40, %v1072_v3  ;;  %v1456_v16 = vmul.f32 %v3275_v20, %v3466_v41 }
  0x4c   : > { %v1628_v33 = vrot.slane %v1527_v24, 1  ;;  %v414_v61 = vmul.f32 %v3263_v13, %v3386_v1  ;;  %v1872_v38 = vrot.slane %v1771_v25, 2  ;;  %v3522_v39 = vmul.f32 %v3263_v13, %v3389_v2 }
  0x4d   : > { %v1731_v32 = vadd.f32 %v1627_v6, %v1487_v35  ;;  %v864_v37 = vadd.f32 %v761_v15, %v619_v29  ;;  %v1317_v42 = vsel %vm746_vm1, %v1314_v43, %v1316_v30  ;;  %v343_v45 = vmul.f32 %v3261_v12, %v3386_v1 }
  0x4e   : > { %v517_v40 = vrot.slane %v414_v61, 1  ;;  %v659_v47 = vmul.f32 %v3265_v14, %v3386_v1  ;;  %v518_v48 = vrot.slane %v3522_v39, 1  ;;  %v660_v49 = vmul.f32 %v3265_v14, %v3389_v2 }
  0x4f   : > { %v1975_v22 = vadd.f32 %v1871_v27, %v1731_v32  ;;  %v932_v62 = vadd.f32 %v900_v11, %v864_v37  ;;  %v901_v21 = vmul.f32 %v3269_v17, %v3462_v34  ;;  %v972_v43 = vmul.f32 %v3271_v18, %v3462_v34 }
  0x50   : > { %v762_v51 = vrot.slane %v659_v47, 2  ;;  %v973_v54 = vmul.f32 %v3271_v18, %v3466_v41  ;;  %v519_v23 = vsel %vm501_vm0, %v517_v40, %v518_v48  ;;  %v763_v31 = vrot.slane %v660_v49, 2  ;;  %v3584_v40 = vld [vmem:[%s3258_s21 + $0x88] sm:$0x3] }
  0x51   : > { %2974 = vmatprep.mubr.msk.f32.mxu0 %vm2004_vm2, %v1975_v22  ;;  %v1176_v1 = vadd.f32 %v1073_v28, %v932_v62  ;;  %v1216_v56 = vmul.f32 %v3273_v19, %v3462_v34  ;;  %v620_v58 = vadd.f32 %v519_v23, %v343_v45  ;;  %v1074_v57 = vrot.slane %v972_v43, 1 }
  0x52   : > { %v1075_v59 = vrot.slane %v973_v54, 1  ;;  %v1217_v60 = vmul.f32 %v3273_v19, %v3466_v41  ;;  %v1629_v0 = vsel %vm501_vm0, %v1626_v55, %v1628_v33  ;;  %v764_v6 = vsel %vm746_vm1, %v762_v51, %v763_v31 }
  0x53   : > { %v1420_v50 = vadd.f32 %v1317_v42, %v1176_v1  ;;  %v1318_v52 = vrot.slane %v1216_v56, 2  ;;  %v865_v8 = vadd.f32 %v764_v6, %v620_v58  ;;  %v1528_v10 = vmul.f32 %v3286_v26, %v3546_v5 }
  0x54   : > { %v1076_v11 = vsel %vm501_vm0, %v1074_v57, %v1075_v59  ;;  %v1319_v3 = vrot.slane %v1217_v60, 2  ;;  %v3557_v15 = vmul.f32 %v3286_v26, %v3550_v7  ;;  %v1772_v55 = vmul.f32 %v3302_v36, %v3546_v5 }
  0x55   : > { %v1488_v46 = vadd.f32 %v1456_v16, %v1420_v50  ;;  %v3563_v24 = vmul.f32 %v3302_v36, %v3550_v7  ;;  %v1873_v25 = vsel %vm746_vm1, %v1870_v63, %v1872_v38  ;;  %v933_v35 = vadd.f32 %v901_v21, %v865_v8 }
  0x56   : > { %v1320_v27 = vsel %vm746_vm1, %v1318_v52, %v1319_v3  ;;  %v1457_v29 = vmul.f32 %v3275_v20, %v3546_v5  ;;  %v1630_v28 = vrot.slane %v1528_v10, 1  ;;  %v1631_v16 = vrot.slane %v3557_v15, 1 }
  0x57   : > { %v1732_v30 = vadd.f32 %v1629_v0, %v1488_v46  ;;  %v344_v33 = vmul.f32 %v3261_v12, %v3389_v2  ;;  %v1177_v61 = vadd.f32 %v1076_v11, %v933_v35  ;;  %v1874_v32 = vrot.slane %v1772_v55, 2 }
  0x58   : > { %v416_v53 = vmul.f32 %v3263_v13, %v3422_v44  ;;  %v661_v63 = vmul.f32 %v3265_v14, %v3422_v44  ;;  %v1875_v38 = vrot.slane %v3563_v24, 2  ;;  %v902_v39 = vmul.f32 %v3269_v17, %v3466_v41 }
  0x59   : > { %v1976_v37 = vadd.f32 %v1873_v25, %v1732_v30  ;;  %v974_v42 = vmul.f32 %v3271_v18, %v3499_v9  ;;  %v1421_v45 = vadd.f32 %v1320_v27, %v1177_v61  ;;  %v1218_v22 = vmul.f32 %v3273_v19, %v3499_v9  ;;  %v3624_v61 = vld [vmem:[%s3258_s21 + $0x90] sm:$0xff] }
  0x5a   : > { %v520_v2 = vrot.slane %v416_v53, 1  ;;  %v765_v47 = vrot.slane %v661_v63, 2  ;;  %v1632_v44 = vsel %vm501_vm0, %v1630_v28, %v1631_v16  ;;  %v1530_v49 = vmul.f32 %v3286_v26, %v3584_v40 }
  0x5b   : > { %2975 = vmatmul.mubr.msk.f32.gmra.mrb[4].mxu0 %vm2004_vm2, %v1976_v37  ;;  %v1077_v62 = vrot.slane %v974_v42, 1  ;;  %v1774_v51 = vmul.f32 %v3302_v36, %v3584_v40  ;;  %v1489_v21 = vadd.f32 %v1457_v29, %v1421_v45  ;;  %v1321_v1 = vrot.slane %v1218_v22, 2  ;;  %v3629_v45 = vld [vmem:[%s3258_s21 + $0x98] sm:$0xff] }
  0x5c   : > { %v521_v43 = vsel %vm501_vm0, %v518_v48, %v520_v2  ;;  %v766_v54 = vsel %vm746_vm1, %v763_v31, %v765_v47  ;;  %v1876_v23 = vsel %vm746_vm1, %v1874_v32, %v1875_v38  ;;  %v1458_v57 = vmul.f32 %v3275_v20, %v3550_v7 }
  0x5d   : > { %v621_v56 = vadd.f32 %v521_v43, %v344_v33  ;;  %v1078_v58 = vsel %vm501_vm0, %v1075_v59, %v1077_v62  ;;  %v1733_v60 = vadd.f32 %v1632_v44, %v1489_v21  ;;  %v1633_v50 = vrot.slane %v1530_v49, 1 }
  0x5e   : > { %v1877_v0 = vrot.slane %v1774_v51, 2  ;;  %v417_v6 = vmul.f32 %v3263_v13, %v3462_v34  ;;  %v1322_v48 = vsel %vm746_vm1, %v1319_v3, %v1321_v1  ;;  %v345_v31 = vmul.f32 %v3261_v12, %v3462_v34 }
  0x5f   : > { %v866_v52 = vadd.f32 %v766_v54, %v621_v56  ;;  %v418_v8 = vmul.f32 %v3263_v13, %v3466_v41  ;;  %v1977_v11 = vadd.f32 %v1876_v23, %v1733_v60  ;;  %v662_v10 = vmul.f32 %v3265_v14, %v3462_v34 }
  0x60   : > { %v522_v59 = vrot.slane %v417_v6, 1  ;;  %v663_v46 = vmul.f32 %v3265_v14, %v3466_v41  ;;  %v903_v3 = vmul.f32 %v3269_v17, %v3546_v5  ;;  %v975_v24 = vmul.f32 %v3271_v18, %v3546_v5 }
  0x61   : > { %v934_v15 = vadd.f32 %v902_v39, %v866_v52  ;;  %v523_v55 = vrot.slane %v418_v8, 1  ;;  %2977 = vmatprep.mubr.msk.f32.mxu0 %vm2004_vm2, %v1977_v11  ;;  %v767_v25 = vrot.slane %v662_v10, 2  ;;  %v976_v27 = vmul.f32 %v3271_v18, %v3550_v7  ;;  %v3660_v10 = vld [vmem:[%s3258_s21 + $0xa0] sm:$0x3] }
  0x62   : > { %v768_v35 = vrot.slane %v663_v46, 2  ;;  %v1219_v34 = vmul.f32 %v3273_v19, %v3546_v5  ;;  %v1079_v28 = vrot.slane %v975_v24, 1  ;;  %v1220_v33 = vmul.f32 %v3273_v19, %v3550_v7 }
  0x63   : > { %v1178_v29 = vadd.f32 %v1078_v58, %v934_v15  ;;  %v524_v30 = vsel %vm501_vm0, %v522_v59, %v523_v55  ;;  %v1080_v63 = vrot.slane %v976_v27, 1  ;;  %v1634_v42 = vsel %vm501_vm0, %v1631_v16, %v1633_v50 }
  0x64   : > { %v622_v32 = vadd.f32 %v524_v30, %v345_v31  ;;  %v769_v53 = vsel %vm746_vm1, %v767_v25, %v768_v35  ;;  %v1323_v37 = vrot.slane %v1219_v34, 2  ;;  %v1324_v2 = vrot.slane %v1220_v33, 2 }
  0x65   : > { %v1422_v39 = vadd.f32 %v1322_v48, %v1178_v29  ;;  %v1531_v47 = vmul.f32 %v3286_v26, %v3624_v61  ;;  %v1878_v22 = vsel %vm746_vm1, %v1875_v38, %v1877_v0  ;;  %v3636_v62 = vmul.f32 %v3286_v26, %v3629_v45 }
  0x66   : > { %v867_v44 = vadd.f32 %v769_v53, %v622_v32  ;;  %v1775_v49 = vmul.f32 %v3302_v36, %v3624_v61  ;;  %v1081_v21 = vsel %vm501_vm0, %v1079_v28, %v1080_v63  ;;  %v3643_v43 = vmul.f32 %v3302_v36, %v3629_v45 }
  0x67   : > { %v1490_v51 = vadd.f32 %v1458_v57, %v1422_v39  ;;  %v1635_v16 = vrot.slane %v1531_v47, 1  ;;  %v1325_v1 = vsel %vm746_vm1, %v1323_v37, %v1324_v2  ;;  %v1459_v38 = vmul.f32 %v3275_v20, %v3624_v61 }
  0x68   : > { %v935_v54 = vadd.f32 %v903_v3, %v867_v44  ;;  %v1636_v23 = vrot.slane %v3636_v62, 1  ;;  %v1879_v58 = vrot.slane %v1775_v49, 2  ;;  %v419_v57 = vmul.f32 %v3263_v13, %v3499_v9 }
  0x69   : > { %v1734_v56 = vadd.f32 %v1634_v42, %v1490_v51  ;;  %v664_v60 = vmul.f32 %v3265_v14, %v3499_v9  ;;  %v1880_v0 = vrot.slane %v3643_v43, 2  ;;  %v346_v6 = vmul.f32 %v3261_v12, %v3466_v41 }
  0x6a   : > { %v1179_v50 = vadd.f32 %v1081_v21, %v935_v54  ;;  %v977_v52 = vmul.f32 %v3271_v18, %v3584_v40  ;;  %v1637_v31 = vsel %vm501_vm0, %v1635_v16, %v1636_v23  ;;  %v525_v8 = vrot.slane %v419_v57, 1 }
  0x6b   : > { %v1978_v48 = vadd.f32 %v1878_v22, %v1734_v56  ;;  %v770_v11 = vrot.slane %v664_v60, 2  ;;  %v904_v9 = vmul.f32 %v3269_v17, %v3550_v7  ;;  %v1221_v15 = vmul.f32 %v3273_v19, %v3584_v40 }
  0x6c   : > { %v1423_v59 = vadd.f32 %v1325_v1, %v1179_v50  ;;  %v1082_v46 = vrot.slane %v977_v52, 1  ;;  %v526_v41 = vsel %vm501_vm0, %v523_v55, %v525_v8  ;;  %v1533_v24 = vmul.f32 %v3286_v26, %v3660_v10 }
  0x6d   : > { %2978 = vmatmul.mubr.msk.f32.gmra.mrb[6].mxu0 %vm2004_vm2, %v1978_v48  ;;  %v771_v3 = vsel %vm746_vm1, %v768_v35, %v770_v11  ;;  %v1777_v25 = vmul.f32 %v3302_v36, %v3660_v10  ;;  %v1881_v34 = vsel %vm746_vm1, %v1879_v58, %v1880_v0  ;;  %v623_v29 = vadd.f32 %v526_v41, %v346_v6  ;;  %v3707_v48 = vld [vmem:[%s3258_s21 + $0xa8] sm:$0xff]  ;;  %v3711_v11 = vld [vmem:[%s3258_s21 + $0xb0] sm:$0xff] }
  0x6e   : > { %v1491_v27 = vadd.f32 %v1459_v38, %v1423_v59  ;;  %v1326_v30 = vrot.slane %v1221_v15, 2  ;;  %v1083_v28 = vsel %vm501_vm0, %v1080_v63, %v1082_v46  ;;  %v1460_v55 = vmul.f32 %v3275_v20, %v3629_v45 }
  0x6f   : > { %v1638_v33 = vrot.slane %v1533_v24, 1  ;;  %v420_v35 = vmul.f32 %v3263_v13, %v3546_v5  ;;  %v868_v53 = vadd.f32 %v771_v3, %v623_v29  ;;  %v1882_v37 = vrot.slane %v1777_v25, 2 }
  0x70   : > { %v1735_v32 = vadd.f32 %v1637_v31, %v1491_v27  ;;  %v3683_v39 = vmul.f32 %v3263_v13, %v3550_v7  ;;  %v1327_v42 = vsel %vm746_vm1, %v1324_v2, %v1326_v30  ;;  %v347_v47 = vmul.f32 %v3261_v12, %v3546_v5 }
  0x71   : > { %v527_v63 = vrot.slane %v420_v35, 1  ;;  %v665_v22 = vmul.f32 %v3265_v14, %v3546_v5  ;;  %v936_v62 = vadd.f32 %v904_v9, %v868_v53  ;;  %v666_v51 = vmul.f32 %v3265_v14, %v3550_v7 }
  0x72   : > { %v1979_v44 = vadd.f32 %v1881_v34, %v1735_v32  ;;  %v528_v49 = vrot.slane %v3683_v39, 1  ;;  %v905_v16 = vmul.f32 %v3269_v17, %v3624_v61  ;;  %v978_v2 = vmul.f32 %v3271_v18, %v3624_v61 }
  0x73   : > { %v772_v21 = vrot.slane %v665_v22, 2  ;;  %v979_v54 = vmul.f32 %v3271_v18, %v3629_v45  ;;  %v1180_v5 = vadd.f32 %v1083_v28, %v936_v62  ;;  %v773_v38 = vrot.slane %v666_v51, 2 }
  0x74   : > { %2980 = vmatprep.mubr.msk.f32.mxu0 %vm2004_vm2, %v1979_v44  ;;  %v529_v1 = vsel %vm501_vm0, %v527_v63, %v528_v49  ;;  %v1222_v56 = vmul.f32 %v3273_v19, %v3624_v61  ;;  %v1084_v57 = vrot.slane %v978_v2, 1  ;;  %v1223_v50 = vmul.f32 %v3273_v19, %v3629_v45  ;;  %v3745_v63 = vld [vmem:[%s3258_s21 + $0xb8] sm:$0x3] }
  0x75   : > { %v624_v58 = vadd.f32 %v529_v1, %v347_v47  ;;  %v1085_v60 = vrot.slane %v979_v54, 1  ;;  %v1424_v6 = vadd.f32 %v1327_v42, %v1180_v5  ;;  %v1639_v52 = vsel %vm501_vm0, %v1636_v23, %v1638_v33 }
  0x76   : > { %v774_v31 = vsel %vm746_vm1, %v772_v21, %v773_v38  ;;  %v1328_v8 = vrot.slane %v1222_v56, 2  ;;  %v1329_v46 = vrot.slane %v1223_v50, 2  ;;  %v1534_v15 = vmul.f32 %v3286_v26, %v3707_v48 }
  0x77   : > { %v869_v59 = vadd.f32 %v774_v31, %v624_v58  ;;  %v1086_v9 = vsel %vm501_vm0, %v1084_v57, %v1085_v60  ;;  %v1492_v41 = vadd.f32 %v1460_v55, %v1424_v6  ;;  %v3718_v3 = vmul.f32 %v3286_v26, %v3711_v11 }
  0x78   : > { %v1778_v23 = vmul.f32 %v3302_v36, %v3707_v48  ;;  %v3724_v24 = vmul.f32 %v3302_v36, %v3711_v11  ;;  %v1883_v25 = vsel %vm746_vm1, %v1880_v0, %v1882_v37  ;;  %v1330_v34 = vsel %vm746_vm1, %v1328_v8, %v1329_v46 }
  0x79   : > { %v937_v27 = vadd.f32 %v905_v16, %v869_v59  ;;  %v1461_v29 = vmul.f32 %v3275_v20, %v3707_v48  ;;  %v1736_v30 = vadd.f32 %v1639_v52, %v1492_v41  ;;  %v1640_v28 = vrot.slane %v1534_v15, 1 }
  0x7a   : > { %v1641_v55 = vrot.slane %v3718_v3, 1  ;;  %v348_v33 = vmul.f32 %v3261_v12, %v3550_v7  ;;  %v1884_v32 = vrot.slane %v1778_v23, 2  ;;  %v422_v43 = vmul.f32 %v3263_v13, %v3584_v40 }
  0x7b   : > { %v1181_v35 = vadd.f32 %v1086_v9, %v937_v27  ;;  %v667_v0 = vmul.f32 %v3265_v14, %v3584_v40  ;;  %v1980_v53 = vadd.f32 %v1883_v25, %v1736_v30  ;;  %v1885_v37 = vrot.slane %v3724_v24, 2 }
  0x7c   : > { %v906_v39 = vmul.f32 %v3269_v17, %v3629_v45  ;;  %v980_v42 = vmul.f32 %v3271_v18, %v3660_v10  ;;  %v530_v7 = vrot.slane %v422_v43, 1  ;;  %v1224_v44 = vmul.f32 %v3273_v19, %v3660_v10 }
  0x7d   : > { %v1425_v47 = vadd.f32 %v1330_v34, %v1181_v35  ;;  %v775_v22 = vrot.slane %v667_v0, 2  ;;  %2981 = vmatmul.mubr.msk.f32.gmra.mrb[8].mxu0 %vm2004_vm2, %v1980_v53  ;;  %v1642_v40 = vsel %vm501_vm0, %v1640_v28, %v1641_v55  ;;  %v1536_v51 = vmul.f32 %v3286_v26, %v3745_v63  ;;  %v3785_v35 = vld [vmem:[%s3258_s21 + $0xc0] sm:$0xff] }
  0x7e   : > { %v1087_v62 = vrot.slane %v980_v42, 1  ;;  %v1780_v21 = vmul.f32 %v3302_v36, %v3745_v63  ;;  %v531_v2 = vsel %vm501_vm0, %v528_v49, %v530_v7  ;;  %v1331_v5 = vrot.slane %v1224_v44, 2 }
  0x7f   : > { %v1493_v16 = vadd.f32 %v1461_v29, %v1425_v47  ;;  %v776_v54 = vsel %vm746_vm1, %v773_v38, %v775_v22  ;;  %v1886_v1 = vsel %vm746_vm1, %v1884_v32, %v1885_v37  ;;  %v625_v56 = vadd.f32 %v531_v2, %v348_v33  ;;  %v3790_v47 = vld [vmem:[%s3258_s21 + $0xc8] sm:$0xff] }
  0x80   : > { %v1088_v58 = vsel %vm501_vm0, %v1085_v60, %v1087_v62  ;;  %v1462_v57 = vmul.f32 %v3275_v20, %v3711_v11  ;;  %v1643_v6 = vrot.slane %v1536_v51, 1  ;;  %v1887_v52 = vrot.slane %v1780_v21, 2 }
  0x81   : > { %v1737_v50 = vadd.f32 %v1642_v40, %v1493_v16  ;;  %v423_v31 = vmul.f32 %v3263_v13, %v3624_v61  ;;  %v870_v8 = vadd.f32 %v776_v54, %v625_v56  ;;  %v1332_v49 = vsel %vm746_vm1, %v1329_v46, %v1331_v5 }
  0x82   : > { %v349_v38 = vmul.f32 %v3261_v12, %v3624_v61  ;;  %v424_v59 = vmul.f32 %v3263_v13, %v3629_v45  ;;  %v668_v15 = vmul.f32 %v3265_v14, %v3624_v61  ;;  %v669_v41 = vmul.f32 %v3265_v14, %v3629_v45 }
  0x83   : > { %v1981_v9 = vadd.f32 %v1886_v1, %v1737_v50  ;;  %v532_v60 = vrot.slane %v423_v31, 1  ;;  %v938_v3 = vadd.f32 %v906_v39, %v870_v8  ;;  %v907_v46 = vmul.f32 %v3269_v17, %v3707_v48 }
  0x84   : > { %v533_v23 = vrot.slane %v424_v59, 1  ;;  %v981_v24 = vmul.f32 %v3271_v18, %v3707_v48  ;;  %v777_v25 = vrot.slane %v668_v15, 2  ;;  %v778_v27 = vrot.slane %v669_v41, 2  ;;  %v3821_v15 = vld [vmem:[%s3258_s21 + $0xd0] sm:$0x3] }
  0x85   : > { %2983 = vmatprep.mubr.msk.f32.mxu0 %vm2004_vm2, %v1981_v9  ;;  %v982_v34 = vmul.f32 %v3271_v18, %v3711_v11  ;;  %v1225_v61 = vmul.f32 %v3273_v19, %v3707_v48  ;;  %v1182_v29 = vadd.f32 %v1088_v58, %v938_v3  ;;  %v1226_v33 = vmul.f32 %v3273_v19, %v3711_v11 }
  0x86   : > { %v534_v30 = vsel %vm501_vm0, %v532_v60, %v533_v23  ;;  %v1089_v28 = vrot.slane %v981_v24, 1  ;;  %v779_v43 = vsel %vm746_vm1, %v777_v25, %v778_v27  ;;  %v1644_v42 = vsel %vm501_vm0, %v1641_v55, %v1643_v6 }
  0x87   : > { %v626_v32 = vadd.f32 %v534_v30, %v349_v38  ;;  %v1090_v0 = vrot.slane %v982_v34, 1  ;;  %v1333_v53 = vrot.slane %v1225_v61, 2  ;;  %v1426_v39 = vadd.f32 %v1332_v49, %v1182_v29 }
  0x88   : > { %v1334_v7 = vrot.slane %v1226_v33, 2  ;;  %v1537_v22 = vmul.f32 %v3286_v26, %v3785_v35  ;;  %v1888_v44 = vsel %vm746_vm1, %v1885_v37, %v1887_v52  ;;  %v3797_v62 = vmul.f32 %v3286_v26, %v3790_v47 }
  0x89   : > { %v871_v40 = vadd.f32 %v779_v43, %v626_v32  ;;  %v1781_v51 = vmul.f32 %v3302_v36, %v3785_v35  ;;  %v1494_v21 = vadd.f32 %v1462_v57, %v1426_v39  ;;  %v1091_v16 = vsel %vm501_vm0, %v1089_v28, %v1090_v0 }
  0x8a   : > { %v1645_v55 = vrot.slane %v1537_v22, 1  ;;  %v3804_v2 = vmul.f32 %v3302_v36, %v3790_v47  ;;  %v1335_v5 = vsel %vm746_vm1, %v1333_v53, %v1334_v7  ;;  %v1463_v37 = vmul.f32 %v3275_v20, %v3785_v35 }
  0x8b   : > { %v939_v54 = vadd.f32 %v907_v46, %v871_v40  ;;  %v1646_v1 = vrot.slane %v3797_v62, 1  ;;  %v1738_v56 = vadd.f32 %v1644_v42, %v1494_v21  ;;  %v1889_v58 = vrot.slane %v1781_v51, 2 }
  0x8c   : > { %v425_v57 = vmul.f32 %v3263_v13, %v3660_v10  ;;  %v670_v50 = vmul.f32 %v3265_v14, %v3660_v10  ;;  %v1890_v52 = vrot.slane %v3804_v2, 2  ;;  %v350_v31 = vmul.f32 %v3261_v12, %v3629_v45 }
  0x8d   : > { %v1183_v6 = vadd.f32 %v1091_v16, %v939_v54  ;;  %v983_v8 = vmul.f32 %v3271_v18, %v3745_v63  ;;  %v1982_v49 = vadd.f32 %v1888_v44, %v1738_v56  ;;  %v1647_v38 = vsel %vm501_vm0, %v1645_v55, %v1646_v1 }
  0x8e   : > { %v535_v59 = vrot.slane %v425_v57, 1  ;;  %v780_v9 = vrot.slane %v670_v50, 2  ;;  %v908_v10 = vmul.f32 %v3269_v17, %v3711_v11  ;;  %v1227_v3 = vmul.f32 %v3273_v19, %v3745_v63 }
  0x8f   : > { %v1427_v60 = vadd.f32 %v1335_v5, %v1183_v6  ;;  %v1092_v41 = vrot.slane %v983_v8, 1  ;;  %2984 = vmatmul.mubr.msk.f32.gmra.mrb[10].mxu0 %vm2004_vm2, %v1982_v49  ;;  %v1539_v24 = vmul.f32 %v3286_v26, %v3821_v15  ;;  %v1783_v25 = vmul.f32 %v3302_v36, %v3821_v15  ;;  %v3868_v8 = vld [vmem:[%s3258_s21 + $0xd8] sm:$0xff] }
  0x90   : > { %v536_v45 = vsel %vm501_vm0, %v533_v23, %v535_v59  ;;  %v781_v46 = vsel %vm746_vm1, %v778_v27, %v780_v9  ;;  %v1891_v61 = vsel %vm746_vm1, %v1889_v58, %v1890_v52  ;;  %v1336_v30 = vrot.slane %v1227_v3, 2  ;;  %v3872_v59 = vld [vmem:[%s3258_s21 + $0xe0] sm:$0xff] }
  0x91   : > { %v1495_v34 = vadd.f32 %v1463_v37, %v1427_v60  ;;  %v627_v29 = vadd.f32 %v536_v45, %v350_v31  ;;  %v1093_v28 = vsel %vm501_vm0, %v1090_v0, %v1092_v41  ;;  %v1464_v23 = vmul.f32 %v3275_v20, %v3790_v47 }
  0x92   : > { %v1648_v33 = vrot.slane %v1539_v24, 1  ;;  %v426_v27 = vmul.f32 %v3263_v13, %v3707_v48  ;;  %v1892_v53 = vrot.slane %v1783_v25, 2  ;;  %v3844_v36 = vmul.f32 %v3263_v13, %v3711_v11 }
  0x93   : > { %v1739_v32 = vadd.f32 %v1647_v38, %v1495_v34  ;;  %v872_v43 = vadd.f32 %v781_v46, %v627_v29  ;;  %v1337_v39 = vsel %vm746_vm1, %v1334_v7, %v1336_v30  ;;  %v351_v42 = vmul.f32 %v3261_v12, %v3707_v48 }
  0x94   : > { %v537_v0 = vrot.slane %v426_v27, 1  ;;  %v671_v22 = vmul.f32 %v3265_v14, %v3707_v48  ;;  %v538_v62 = vrot.slane %v3844_v36, 1  ;;  %v672_v51 = vmul.f32 %v3265_v14, %v3711_v11 }
  0x95   : > { %v1983_v44 = vadd.f32 %v1891_v61, %v1739_v32  ;;  %v940_v40 = vadd.f32 %v908_v10, %v872_v43  ;;  %v909_v16 = vmul.f32 %v3269_v17, %v3785_v35  ;;  %v984_v7 = vmul.f32 %v3271_v18, %v3785_v35 }
  0x96   : > { %v782_v21 = vrot.slane %v671_v22, 2  ;;  %v985_v55 = vmul.f32 %v3271_v18, %v3790_v47  ;;  %v539_v54 = vsel %vm501_vm0, %v537_v0, %v538_v62  ;;  %v783_v5 = vrot.slane %v672_v51, 2  ;;  %v3911_v0 = vld [vmem:[%s3258_s21 + $0xe8] sm:$0x3] }
  0x97   : > { %2986 = vmatprep.mubr.msk.f32.mxu0 %vm2004_vm2, %v1983_v44  ;;  %v1184_v48 = vadd.f32 %v1093_v28, %v940_v40  ;;  %v1228_v37 = vmul.f32 %v3273_v19, %v3785_v35  ;;  %v628_v56 = vadd.f32 %v539_v54, %v351_v42  ;;  %v1094_v58 = vrot.slane %v984_v7, 1 }
  0x98   : > { %v1095_v57 = vrot.slane %v985_v55, 1  ;;  %v1229_v50 = vmul.f32 %v3273_v19, %v3790_v47  ;;  %v1649_v31 = vsel %vm501_vm0, %v1646_v1, %v1648_v33  ;;  %v784_v49 = vsel %vm746_vm1, %v782_v21, %v783_v5  ;;  %v3884_v1 = vld [vmem:[%s5014_s1 + $0x8] ss:$0 sm:$0xff] }
  0x99   : > { %v1428_v6 = vadd.f32 %v1337_v39, %v1184_v48  ;;  %v1338_v38 = vrot.slane %v1228_v37, 2  ;;  %v873_v9 = vadd.f32 %v784_v49, %v628_v56  ;;  %v1540_v41 = vmul.f32 %v3286_v26, %v3868_v8 }
  0x9a   : > { %v1096_v60 = vsel %vm501_vm0, %v1094_v58, %v1095_v57  ;;  %v1339_v10 = vrot.slane %v1229_v50, 2  ;;  %v3879_v45 = vmul.f32 %v3286_v26, %v3872_v59  ;;  %v1784_v46 = vmul.f32 %v3884_v1, %v3868_v8 }
  0x9b   : > { %v1496_v3 = vadd.f32 %v1464_v23, %v1428_v6  ;;  %v3890_v24 = vmul.f32 %v3884_v1, %v3872_v59  ;;  %v1893_v25 = vsel %vm746_vm1, %v1890_v52, %v1892_v53  ;;  %v941_v34 = vadd.f32 %v909_v16, %v873_v9 }
  0x9c   : > { %v1340_v61 = vsel %vm746_vm1, %v1338_v38, %v1339_v10  ;;  %v1465_v29 = vmul.f32 %v3275_v20, %v3868_v8  ;;  %v1650_v28 = vrot.slane %v1540_v41, 1  ;;  %v1651_v23 = vrot.slane %v3879_v45, 1 }
  0x9d   : > { %v1740_v30 = vadd.f32 %v1649_v31, %v1496_v3  ;;  %v352_v33 = vmul.f32 %v3261_v12, %v3711_v11  ;;  %v1185_v27 = vadd.f32 %v1096_v60, %v941_v34  ;;  %v1894_v32 = vrot.slane %v1784_v46, 2 }
  0x9e   : > { %v428_v2 = vmul.f32 %v3263_v13, %v3745_v63  ;;  %v673_v52 = vmul.f32 %v3265_v14, %v3745_v63  ;;  %v1895_v53 = vrot.slane %v3890_v24, 2  ;;  %v910_v36 = vmul.f32 %v3269_v17, %v3790_v47 }
  0x9f   : > { %v1984_v43 = vadd.f32 %v1893_v25, %v1740_v30  ;;  %v986_v39 = vmul.f32 %v3271_v18, %v3821_v15  ;;  %v1429_v42 = vadd.f32 %v1340_v61, %v1185_v27  ;;  %v1230_v44 = vmul.f32 %v3273_v19, %v3821_v15  ;;  %v3951_v27 = vld [vmem:[%s3258_s21 + $0xf0] sm:$0xff] }
  0xa0   : > { %v540_v11 = vrot.slane %v428_v2, 1  ;;  %v785_v22 = vrot.slane %v673_v52, 2  ;;  %v1652_v63 = vsel %vm501_vm0, %v1650_v28, %v1651_v23  ;;  %v1542_v51 = vmul.f32 %v3286_v26, %v3911_v0 }
  0xa1   : > { %2987 = vmatmul.mubr.msk.f32.gmra.mrb[12].mxu0 %vm2004_vm2, %v1984_v43  ;;  %v1097_v40 = vrot.slane %v986_v39, 1  ;;  %v1786_v21 = vmul.f32 %v3884_v1, %v3911_v0  ;;  %v1497_v16 = vadd.f32 %v1465_v29, %v1429_v42  ;;  %v1341_v48 = vrot.slane %v1230_v44, 2  ;;  %v3956_v42 = vld [vmem:[%s3258_s21 + $0xf8] sm:$0xff] }
  0xa2   : > { %v541_v7 = vsel %vm501_vm0, %v538_v62, %v540_v11  ;;  %v786_v55 = vsel %vm746_vm1, %v783_v5, %v785_v22  ;;  %v1896_v54 = vsel %vm746_vm1, %v1894_v32, %v1895_v53  ;;  %v1466_v58 = vmul.f32 %v3275_v20, %v3872_v59 }
  0xa3   : > { %v629_v37 = vadd.f32 %v541_v7, %v352_v33  ;;  %v1098_v56 = vsel %vm501_vm0, %v1095_v57, %v1097_v40  ;;  %v1741_v50 = vadd.f32 %v1652_v63, %v1497_v16  ;;  %v1653_v6 = vrot.slane %v1542_v51, 1 }
  0xa4   : > { %v1897_v31 = vrot.slane %v1786_v21, 2  ;;  %v429_v49 = vmul.f32 %v3263_v13, %v3785_v35  ;;  %v1342_v62 = vsel %vm746_vm1, %v1339_v10, %v1341_v48  ;;  %v353_v5 = vmul.f32 %v3261_v12, %v3785_v35 }
  0xa5   : > { %v874_v38 = vadd.f32 %v786_v55, %v629_v37  ;;  %v430_v9 = vmul.f32 %v3263_v13, %v3790_v47  ;;  %v1985_v60 = vadd.f32 %v1896_v54, %v1741_v50  ;;  %v674_v41 = vmul.f32 %v3265_v14, %v3785_v35 }
  0xa6   : > { %v542_v57 = vrot.slane %v429_v49, 1  ;;  %v675_v3 = vmul.f32 %v3265_v14, %v3790_v47  ;;  %v911_v10 = vmul.f32 %v3269_v17, %v3868_v8  ;;  %v987_v24 = vmul.f32 %v3271_v18, %v3868_v8 }
  0xa7   : > { %v942_v45 = vadd.f32 %v910_v36, %v874_v38  ;;  %v543_v46 = vrot.slane %v430_v9, 1  ;;  %2989 = vmatprep.mubr.msk.f32.mxu0 %vm2004_vm2, %v1985_v60  ;;  %v787_v25 = vrot.slane %v674_v41, 2  ;;  %v988_v61 = vmul.f32 %v3271_v18, %v3872_v59  ;;  %v3987_v41 = vld [vmem:[%s3258_s21 + $0x100] sm:$0x3] }
  0xa8   : > { %v788_v34 = vrot.slane %v675_v3, 2  ;;  %v1231_v35 = vmul.f32 %v3273_v19, %v3868_v8  ;;  %v1099_v28 = vrot.slane %v987_v24, 1  ;;  %v1232_v33 = vmul.f32 %v3273_v19, %v3872_v59 }
  0xa9   : > { %v1186_v29 = vadd.f32 %v1098_v56, %v942_v45  ;;  %v544_v30 = vsel %vm501_vm0, %v542_v57, %v543_v46  ;;  %v1100_v52 = vrot.slane %v988_v61, 1  ;;  %v1654_v39 = vsel %vm501_vm0, %v1651_v23, %v1653_v6 }
  0xaa   : > { %v630_v32 = vadd.f32 %v544_v30, %v353_v5  ;;  %v789_v2 = vsel %vm746_vm1, %v787_v25, %v788_v34  ;;  %v1343_v43 = vrot.slane %v1231_v35, 2  ;;  %v1344_v11 = vrot.slane %v1232_v33, 2 }
  0xab   : > { %v1430_v36 = vadd.f32 %v1342_v62, %v1186_v29  ;;  %v1543_v22 = vmul.f32 %v3286_v26, %v3951_v27  ;;  %v1898_v44 = vsel %vm746_vm1, %v1895_v53, %v1897_v31  ;;  %v3963_v40 = vmul.f32 %v3286_v26, %v3956_v42 }
  0xac   : > { %v875_v63 = vadd.f32 %v789_v2, %v630_v32  ;;  %v1787_v51 = vmul.f32 %v3884_v1, %v3951_v27  ;;  %v1101_v16 = vsel %vm501_vm0, %v1099_v28, %v1100_v52  ;;  %v3970_v7 = vmul.f32 %v3884_v1, %v3956_v42 }
  0xad   : > { %v1498_v21 = vadd.f32 %v1466_v58, %v1430_v36  ;;  %v1655_v23 = vrot.slane %v1543_v22, 1  ;;  %v1345_v48 = vsel %vm746_vm1, %v1343_v43, %v1344_v11  ;;  %v1467_v53 = vmul.f32 %v3275_v20, %v3951_v27 }
  0xae   : > { %v943_v55 = vadd.f32 %v911_v10, %v875_v63  ;;  %v1656_v54 = vrot.slane %v3963_v40, 1  ;;  %v1899_v56 = vrot.slane %v1787_v51, 2  ;;  %v431_v58 = vmul.f32 %v3263_v13, %v3821_v15 }
  0xaf   : > { %v1742_v37 = vadd.f32 %v1654_v39, %v1498_v21  ;;  %v676_v50 = vmul.f32 %v3265_v14, %v3821_v15  ;;  %v1900_v31 = vrot.slane %v3970_v7, 2  ;;  %v354_v49 = vmul.f32 %v3261_v12, %v3790_v47 }
  0xb0   : > { %v1187_v6 = vadd.f32 %v1101_v16, %v943_v55  ;;  %v989_v38 = vmul.f32 %v3271_v18, %v3911_v0  ;;  %v1657_v5 = vsel %vm501_vm0, %v1655_v23, %v1656_v54  ;;  %v545_v9 = vrot.slane %v431_v58, 1 }
  0xb1   : > { %v1986_v62 = vadd.f32 %v1898_v44, %v1742_v37  ;;  %v790_v60 = vrot.slane %v676_v50, 2  ;;  %v912_v15 = vmul.f32 %v3269_v17, %v3872_v59  ;;  %v1233_v45 = vmul.f32 %v3273_v19, %v3911_v0 }
  0xb2   : > { %v1431_v57 = vadd.f32 %v1345_v48, %v1187_v6  ;;  %v1102_v3 = vrot.slane %v989_v38, 1  ;;  %v546_v47 = vsel %vm501_vm0, %v543_v46, %v545_v9  ;;  %v1545_v24 = vmul.f32 %v3286_v26, %v3987_v41 }
  0xb3   : > { %2990 = vmatmul.mubr.msk.f32.gmra.mrb[14].mxu0 %vm2004_vm2, %v1986_v62  ;;  %v791_v10 = vsel %vm746_vm1, %v788_v34, %v790_v60  ;;  %v1789_v25 = vmul.f32 %v3884_v1, %v3987_v41  ;;  %v1901_v35 = vsel %vm746_vm1, %v1899_v56, %v1900_v31  ;;  %v631_v29 = vadd.f32 %v546_v47, %v354_v49  ;;  %v4034_v62 = vld [vmem:[%s3258_s21 + $0x108] sm:$0xff]  ;;  %v4038_v60 = vld [vmem:[%s3258_s21 + $0x110] sm:$0xff] }
  0xb4   : > { %v1499_v61 = vadd.f32 %v1467_v53, %v1431_v57  ;;  %v1346_v30 = vrot.slane %v1233_v45, 2  ;;  %v1103_v28 = vsel %vm501_vm0, %v1100_v52, %v1102_v3  ;;  %v1468_v46 = vmul.f32 %v3275_v20, %v3956_v42 }
  0xb5   : > { %v1658_v33 = vrot.slane %v1545_v24, 1  ;;  %v432_v34 = vmul.f32 %v3263_v13, %v3868_v8  ;;  %v876_v2 = vadd.f32 %v791_v10, %v631_v29  ;;  %v1902_v43 = vrot.slane %v1789_v25, 2 }
  0xb6   : > { %v1743_v32 = vadd.f32 %v1657_v5, %v1499_v61  ;;  %v4010_v36 = vmul.f32 %v3263_v13, %v3872_v59  ;;  %v1347_v39 = vsel %vm746_vm1, %v1344_v11, %v1346_v30  ;;  %v355_v22 = vmul.f32 %v3261_v12, %v3868_v8 }
  0xb7   : > { %v547_v52 = vrot.slane %v432_v34, 1  ;;  %v677_v44 = vmul.f32 %v3265_v14, %v3868_v8  ;;  %v944_v40 = vadd.f32 %v912_v15, %v876_v2  ;;  %v678_v21 = vmul.f32 %v3265_v14, %v3872_v59 }
  0xb8   : > { %v1987_v63 = vadd.f32 %v1901_v35, %v1743_v32  ;;  %v548_v51 = vrot.slane %v4010_v36, 1  ;;  %v913_v23 = vmul.f32 %v3269_v17, %v3951_v27  ;;  %v990_v11 = vmul.f32 %v3271_v18, %v3951_v27 }
  0xb9   : > { %v792_v16 = vrot.slane %v677_v44, 2  ;;  %v991_v55 = vmul.f32 %v3271_v18, %v3956_v42  ;;  %v1188_v8 = vadd.f32 %v1103_v28, %v944_v40  ;;  %v793_v53 = vrot.slane %v678_v21, 2 }
  0xba   : > { %2992 = vmatprep.mubr.msk.f32.mxu0 %vm2004_vm2, %v1987_v63  ;;  %v549_v48 = vsel %vm501_vm0, %v547_v52, %v548_v51  ;;  %v1234_v37 = vmul.f32 %v3273_v19, %v3951_v27  ;;  %v1104_v58 = vrot.slane %v990_v11, 1  ;;  %v1235_v6 = vmul.f32 %v3273_v19, %v3956_v42  ;;  %v4072_v52 = vld [vmem:[%s3258_s21 + $0x118] sm:$0x3] }
  0xbb   : > { %v632_v56 = vadd.f32 %v549_v48, %v355_v22  ;;  %v1105_v50 = vrot.slane %v991_v55, 1  ;;  %v1432_v49 = vadd.f32 %v1347_v39, %v1188_v8  ;;  %v1659_v38 = vsel %vm501_vm0, %v1656_v54, %v1658_v33 }
  0xbc   : > { %v794_v5 = vsel %vm746_vm1, %v792_v16, %v793_v53  ;;  %v1348_v9 = vrot.slane %v1234_v37, 2  ;;  %v1349_v3 = vrot.slane %v1235_v6, 2  ;;  %v1546_v45 = vmul.f32 %v3286_v26, %v4034_v62 }
  0xbd   : > { %v877_v57 = vadd.f32 %v794_v5, %v632_v56  ;;  %v1106_v15 = vsel %vm501_vm0, %v1104_v58, %v1105_v50  ;;  %v1500_v47 = vadd.f32 %v1468_v46, %v1432_v49  ;;  %v4045_v10 = vmul.f32 %v3286_v26, %v4038_v60 }
  0xbe   : > { %v1790_v54 = vmul.f32 %v3884_v1, %v4034_v62  ;;  %v4051_v24 = vmul.f32 %v3884_v1, %v4038_v60  ;;  %v1903_v25 = vsel %vm746_vm1, %v1900_v31, %v1902_v43  ;;  %v1350_v35 = vsel %vm746_vm1, %v1348_v9, %v1349_v3 }
  0xbf   : > { %v945_v61 = vadd.f32 %v913_v23, %v877_v57  ;;  %v1469_v29 = vmul.f32 %v3275_v20, %v4034_v62  ;;  %v1744_v30 = vadd.f32 %v1659_v38, %v1500_v47  ;;  %v1660_v28 = vrot.slane %v1546_v45, 1 }
  0xc0   : > { %v1661_v46 = vrot.slane %v4045_v10, 1  ;;  %v356_v33 = vmul.f32 %v3261_v12, %v3872_v59  ;;  %v1904_v32 = vrot.slane %v1790_v54, 2  ;;  %v434_v7 = vmul.f32 %v3263_v13, %v3911_v0 }
  0xc1   : > { %v1189_v34 = vadd.f32 %v1106_v15, %v945_v61  ;;  %v679_v31 = vmul.f32 %v3265_v14, %v3911_v0  ;;  %v1988_v2 = vadd.f32 %v1903_v25, %v1744_v30  ;;  %v1905_v43 = vrot.slane %v4051_v24, 2 }
  0xc2   : > { %v914_v36 = vmul.f32 %v3269_v17, %v3956_v42  ;;  %v992_v39 = vmul.f32 %v3271_v18, %v3987_v41  ;;  %v550_v59 = vrot.slane %v434_v7, 1  ;;  %v1236_v63 = vmul.f32 %v3273_v19, %v3987_v41 }
  0xc3   : > { %v1433_v22 = vadd.f32 %v1350_v35, %v1189_v34  ;;  %v795_v44 = vrot.slane %v679_v31, 2  ;;  %2993 = vmatmul.mubr.msk.f32.gmra.mrb[16].mxu0 %vm2004_vm2, %v1988_v2  ;;  %v1662_v0 = vsel %vm501_vm0, %v1660_v28, %v1661_v46  ;;  %v1548_v21 = vmul.f32 %v3286_v26, %v4072_v52  ;;  %v4112_v34 = vld [vmem:[%s3258_s21 + $0x120] sm:$0xff] }
  0xc4   : > { %v1107_v40 = vrot.slane %v992_v39, 1  ;;  %v1792_v16 = vmul.f32 %v3884_v1, %v4072_v52  ;;  %v551_v11 = vsel %vm501_vm0, %v548_v51, %v550_v59  ;;  %v1351_v8 = vrot.slane %v1236_v63, 2 }
  0xc5   : > { %v1501_v23 = vadd.f32 %v1469_v29, %v1433_v22  ;;  %v796_v55 = vsel %vm746_vm1, %v793_v53, %v795_v44  ;;  %v1906_v48 = vsel %vm746_vm1, %v1904_v32, %v1905_v43  ;;  %v633_v37 = vadd.f32 %v551_v11, %v356_v33  ;;  %v4117_v22 = vld [vmem:[%s3258_s21 + $0x128] sm:$0xff] }
  0xc6   : > { %v1108_v56 = vsel %vm501_vm0, %v1105_v50, %v1107_v40  ;;  %v1470_v58 = vmul.f32 %v3275_v20, %v4038_v60  ;;  %v1663_v49 = vrot.slane %v1548_v21, 1  ;;  %v1907_v38 = vrot.slane %v1792_v16, 2 }
  0xc7   : > { %v1745_v6 = vadd.f32 %v1662_v0, %v1501_v23  ;;  %v435_v5 = vmul.f32 %v3263_v13, %v3951_v27  ;;  %v878_v9 = vadd.f32 %v796_v55, %v633_v37  ;;  %v1352_v51 = vsel %vm746_vm1, %v1349_v3, %v1351_v8 }
  0xc8   : > { %v357_v53 = vmul.f32 %v3261_v12, %v3951_v27  ;;  %v436_v57 = vmul.f32 %v3263_v13, %v3956_v42  ;;  %v680_v45 = vmul.f32 %v3265_v14, %v3951_v27  ;;  %v681_v47 = vmul.f32 %v3265_v14, %v3956_v42 }
  0xc9   : > { %v1989_v15 = vadd.f32 %v1906_v48, %v1745_v6  ;;  %v552_v50 = vrot.slane %v435_v5, 1  ;;  %v946_v10 = vadd.f32 %v914_v36, %v878_v9  ;;  %v915_v3 = vmul.f32 %v3269_v17, %v4034_v62 }
  0xca   : > { %v553_v54 = vrot.slane %v436_v57, 1  ;;  %v993_v24 = vmul.f32 %v3271_v18, %v4034_v62  ;;  %v797_v25 = vrot.slane %v680_v45, 2  ;;  %v798_v61 = vrot.slane %v681_v47, 2  ;;  %v4148_v45 = vld [vmem:[%s3258_s21 + $0x130] sm:$0x3] }
  0xcb   : > { %2995 = vmatprep.mubr.msk.f32.mxu1 %vm2004_vm2, %v1989_v15  ;;  %v994_v35 = vmul.f32 %v3271_v18, %v4038_v60  ;;  %v1237_v27 = vmul.f32 %v3273_v19, %v4034_v62  ;;  %v1190_v29 = vadd.f32 %v1108_v56, %v946_v10  ;;  %v1238_v33 = vmul.f32 %v3273_v19, %v4038_v60 }
  0xcc   : > { %v554_v30 = vsel %vm501_vm0, %v552_v50, %v553_v54  ;;  %v1109_v28 = vrot.slane %v993_v24, 1  ;;  %v799_v7 = vsel %vm746_vm1, %v797_v25, %v798_v61  ;;  %v1664_v39 = vsel %vm501_vm0, %v1661_v46, %v1663_v49 }
  0xcd   : > { %v634_v32 = vadd.f32 %v554_v30, %v357_v53  ;;  %v1110_v31 = vrot.slane %v994_v35, 1  ;;  %v1353_v2 = vrot.slane %v1237_v27, 2  ;;  %v1434_v36 = vadd.f32 %v1352_v51, %v1190_v29 }
  0xce   : > { %v1354_v59 = vrot.slane %v1238_v33, 2  ;;  %v1549_v44 = vmul.f32 %v3286_v26, %v4112_v34  ;;  %v1908_v63 = vsel %vm746_vm1, %v1905_v43, %v1907_v38  ;;  %v4124_v40 = vmul.f32 %v3286_v26, %v4117_v22 }
  0xcf   : > { %v879_v0 = vadd.f32 %v799_v7, %v634_v32  ;;  %v1793_v21 = vmul.f32 %v3884_v1, %v4112_v34  ;;  %v1502_v16 = vadd.f32 %v1470_v58, %v1434_v36  ;;  %v1111_v23 = vsel %vm501_vm0, %v1109_v28, %v1110_v31 }
  0xd0   : > { %v1665_v46 = vrot.slane %v1549_v44, 1  ;;  %v4131_v11 = vmul.f32 %v3884_v1, %v4117_v22  ;;  %v1355_v8 = vsel %vm746_vm1, %v1353_v2, %v1354_v59  ;;  %v1471_v43 = vmul.f32 %v3275_v20, %v4112_v34 }
  0xd1   : > { %v947_v55 = vadd.f32 %v915_v3, %v879_v0  ;;  %v1666_v48 = vrot.slane %v4124_v40, 1  ;;  %v1746_v37 = vadd.f32 %v1664_v39, %v1502_v16  ;;  %v1909_v56 = vrot.slane %v1793_v21, 2 }
  0xd2   : > { %v437_v58 = vmul.f32 %v3263_v13, %v3987_v41  ;;  %v682_v6 = vmul.f32 %v3265_v14, %v3987_v41  ;;  %v1910_v38 = vrot.slane %v4131_v11, 2  ;;  %v358_v5 = vmul.f32 %v3261_v12, %v3956_v42 }
  0xd3   : > { %v1191_v49 = vadd.f32 %v1111_v23, %v947_v55  ;;  %v995_v9 = vmul.f32 %v3271_v18, %v4072_v52  ;;  %v1990_v51 = vadd.f32 %v1908_v63, %v1746_v37  ;;  %v1667_v53 = vsel %vm501_vm0, %v1665_v46, %v1666_v48 }
  0xd4   : > { %v555_v57 = vrot.slane %v437_v58, 1  ;;  %v800_v15 = vrot.slane %v682_v6, 2  ;;  %v916_v41 = vmul.f32 %v3269_v17, %v4038_v60  ;;  %v1239_v10 = vmul.f32 %v3273_v19, %v4072_v52 }
  0xd5   : > { %v1435_v50 = vadd.f32 %v1355_v8, %v1191_v49  ;;  %v1112_v47 = vrot.slane %v995_v9, 1  ;;  %2996 = vmatmul.mubr.msk.f32.vlgmr.msra.gmra.mrb[0].mxu1 %vm2004_vm2, %v1990_v51  ;;  %v1551_v24 = vmul.f32 %v3286_v26, %v4148_v45  ;;  %v1795_v25 = vmul.f32 %v3884_v1, %v4148_v45  ;;  %v4195_v51 = vld [vmem:[%s3258_s21 + $0x138] sm:$0xff] }
  0xd6   : > { %v556_v42 = vsel %vm501_vm0, %v553_v54, %v555_v57  ;;  %v801_v3 = vsel %vm746_vm1, %v798_v61, %v800_v15  ;;  %v1911_v27 = vsel %vm746_vm1, %v1909_v56, %v1910_v38  ;;  %v1356_v30 = vrot.slane %v1239_v10, 2  ;;  %v4199_v15 = vld [vmem:[%s3258_s21 + $0x140] sm:$0xff] }
  0xd7   : > { %v1503_v35 = vadd.f32 %v1471_v43, %v1435_v50  ;;  %v635_v29 = vadd.f32 %v556_v42, %v358_v5  ;;  %v1113_v28 = vsel %vm501_vm0, %v1110_v31, %v1112_v47  ;;  %v1472_v54 = vmul.f32 %v3275_v20, %v4117_v22 }
  0xd8   : > { %v1668_v33 = vrot.slane %v1551_v24, 1  ;;  %v438_v61 = vmul.f32 %v3263_v13, %v4034_v62  ;;  %v1912_v2 = vrot.slane %v1795_v25, 2  ;;  %v4171_v36 = vmul.f32 %v3263_v13, %v4038_v60 }
  0xd9   : > { %v1747_v32 = vadd.f32 %v1667_v53, %v1503_v35  ;;  %v880_v7 = vadd.f32 %v801_v3, %v635_v29  ;;  %v1357_v39 = vsel %vm746_vm1, %v1354_v59, %v1356_v30  ;;  %v359_v44 = vmul.f32 %v3261_v12, %v4034_v62 }
  0xda   : > { %v557_v31 = vrot.slane %v438_v61, 1  ;;  %v683_v63 = vmul.f32 %v3265_v14, %v4034_v62  ;;  %v558_v21 = vrot.slane %v4171_v36, 1  ;;  %v684_v16 = vmul.f32 %v3265_v14, %v4038_v60 }
  0xdb   : > { %v1991_v0 = vadd.f32 %v1911_v27, %v1747_v32  ;;  %v948_v40 = vadd.f32 %v916_v41, %v880_v7  ;;  %v917_v46 = vmul.f32 %v3269_v17, %v4112_v34  ;;  %v996_v59 = vmul.f32 %v3271_v18, %v4112_v34 }
  0xdc   : > { %v802_v23 = vrot.slane %v683_v63, 2  ;;  %v997_v55 = vmul.f32 %v3271_v18, %v4117_v22  ;;  %v559_v8 = vsel %vm501_vm0, %v557_v31, %v558_v21  ;;  %v803_v43 = vrot.slane %v684_v16, 2  ;;  %v4233_v31 = vld [vmem:[%s3258_s21 + $0x148] sm:$0x3] }
  0xdd   : > { %2998 = vmatprep.mubr.msk.f32.mxu1 %vm2004_vm2, %v1991_v0  ;;  %v1192_v62 = vadd.f32 %v1113_v28, %v948_v40  ;;  %v1240_v37 = vmul.f32 %v3273_v19, %v4112_v34  ;;  %v636_v56 = vadd.f32 %v559_v8, %v359_v44  ;;  %v1114_v58 = vrot.slane %v996_v59, 1 }
  0xde   : > { %v1115_v6 = vrot.slane %v997_v55, 1  ;;  %v1241_v49 = vmul.f32 %v3273_v19, %v4117_v22  ;;  %v1669_v9 = vsel %vm501_vm0, %v1666_v48, %v1668_v33  ;;  %v804_v53 = vsel %vm746_vm1, %v802_v23, %v803_v43 }
  0xdf   : > { %v1436_v5 = vadd.f32 %v1357_v39, %v1192_v62  ;;  %v1358_v57 = vrot.slane %v1240_v37, 2  ;;  %v881_v50 = vadd.f32 %v804_v53, %v636_v56  ;;  %v1552_v10 = vmul.f32 %v3286_v26, %v4195_v51 }
  0xe0   : > { %v1116_v41 = vsel %vm501_vm0, %v1114_v58, %v1115_v6  ;;  %v1359_v47 = vrot.slane %v1241_v49, 2  ;;  %v4206_v3 = vmul.f32 %v3286_v26, %v4199_v15  ;;  %v1796_v48 = vmul.f32 %v3884_v1, %v4195_v51 }
  0xe1   : > { %v1504_v42 = vadd.f32 %v1472_v54, %v1436_v5  ;;  %v4212_v24 = vmul.f32 %v3884_v1, %v4199_v15  ;;  %v1913_v25 = vsel %vm746_vm1, %v1910_v38, %v1912_v2  ;;  %v949_v35 = vadd.f32 %v917_v46, %v881_v50 }
  0xe2   : > { %v1360_v27 = vsel %vm746_vm1, %v1358_v57, %v1359_v47  ;;  %v1473_v29 = vmul.f32 %v3275_v20, %v4195_v51  ;;  %v1670_v28 = vrot.slane %v1552_v10, 1  ;;  %v1671_v54 = vrot.slane %v4206_v3, 1 }
  0xe3   : > { %v1748_v30 = vadd.f32 %v1669_v9, %v1504_v42  ;;  %v360_v33 = vmul.f32 %v3261_v12, %v4038_v60  ;;  %v1193_v61 = vadd.f32 %v1116_v41, %v949_v35  ;;  %v1914_v32 = vrot.slane %v1796_v48, 2 }
  0xe4   : > { %v440_v11 = vmul.f32 %v3263_v13, %v4072_v52  ;;  %v685_v38 = vmul.f32 %v3265_v14, %v4072_v52  ;;  %v1915_v2 = vrot.slane %v4212_v24, 2  ;;  %v918_v36 = vmul.f32 %v3269_v17, %v4117_v22 }
  0xe5   : > { %v1992_v7 = vadd.f32 %v1913_v25, %v1748_v30  ;;  %v998_v39 = vmul.f32 %v3271_v18, %v4148_v45  ;;  %v1437_v44 = vadd.f32 %v1360_v27, %v1193_v61  ;;  %v1242_v0 = vmul.f32 %v3273_v19, %v4148_v45  ;;  %v4273_v61 = vld [vmem:[%s3258_s21 + $0x150] sm:$0xff] }
  0xe6   : > { %v560_v60 = vrot.slane %v440_v11, 1  ;;  %v805_v63 = vrot.slane %v685_v38, 2  ;;  %v1672_v52 = vsel %vm501_vm0, %v1670_v28, %v1671_v54  ;;  %v1554_v16 = vmul.f32 %v3286_v26, %v4233_v31 }
  0xe7   : > { %2999 = vmatmul.mubr.msk.f32.gmra.mrb[2].mxu1 %vm2004_vm2, %v1992_v7  ;;  %v1117_v40 = vrot.slane %v998_v39, 1  ;;  %v1798_v23 = vmul.f32 %v3884_v1, %v4233_v31  ;;  %v1505_v46 = vadd.f32 %v1473_v29, %v1437_v44  ;;  %v1361_v62 = vrot.slane %v1242_v0, 2  ;;  %v4278_v44 = vld [vmem:[%s3258_s21 + $0x158] sm:$0xff] }
  0xe8   : > { %v561_v59 = vsel %vm501_vm0, %v558_v21, %v560_v60  ;;  %v806_v55 = vsel %vm746_vm1, %v803_v43, %v805_v63  ;;  %v1916_v8 = vsel %vm746_vm1, %v1914_v32, %v1915_v2  ;;  %v1474_v58 = vmul.f32 %v3275_v20, %v4199_v15 }
  0xe9   : > { %v637_v37 = vadd.f32 %v561_v59, %v360_v33  ;;  %v1118_v56 = vsel %vm501_vm0, %v1115_v6, %v1117_v40  ;;  %v1749_v49 = vadd.f32 %v1672_v52, %v1505_v46  ;;  %v1673_v5 = vrot.slane %v1554_v16, 1 }
  0xea   : > { %v1917_v9 = vrot.slane %v1798_v23, 2  ;;  %v441_v53 = vmul.f32 %v3263_v13, %v4112_v34  ;;  %v1362_v21 = vsel %vm746_vm1, %v1359_v47, %v1361_v62  ;;  %v361_v43 = vmul.f32 %v3261_v12, %v4112_v34 }
  0xeb   : > { %v882_v57 = vadd.f32 %v806_v55, %v637_v37  ;;  %v442_v50 = vmul.f32 %v3263_v13, %v4117_v22  ;;  %v1993_v41 = vadd.f32 %v1916_v8, %v1749_v49  ;;  %v686_v10 = vmul.f32 %v3265_v14, %v4112_v34 }
  0xec   : > { %v562_v6 = vrot.slane %v441_v53, 1  ;;  %v687_v42 = vmul.f32 %v3265_v14, %v4117_v22  ;;  %v919_v47 = vmul.f32 %v3269_v17, %v4195_v51  ;;  %v999_v24 = vmul.f32 %v3271_v18, %v4195_v51 }
  0xed   : > { %v950_v3 = vadd.f32 %v918_v36, %v882_v57  ;;  %v563_v48 = vrot.slane %v442_v50, 1  ;;  %3001 = vmatprep.mubr.msk.f32.mxu1 %vm2004_vm2, %v1993_v41  ;;  %v807_v25 = vrot.slane %v686_v10, 2  ;;  %v1000_v27 = vmul.f32 %v3271_v18, %v4199_v15  ;;  %v4309_v10 = vld [vmem:[%s3258_s21 + $0x160] sm:$0x3] }
  0xee   : > { %v808_v35 = vrot.slane %v687_v42, 2  ;;  %v1243_v34 = vmul.f32 %v3273_v19, %v4195_v51  ;;  %v1119_v28 = vrot.slane %v999_v24, 1  ;;  %v1244_v33 = vmul.f32 %v3273_v19, %v4199_v15 }
  0xef   : > { %v1194_v29 = vadd.f32 %v1118_v56, %v950_v3  ;;  %v564_v30 = vsel %vm501_vm0, %v562_v6, %v563_v48  ;;  %v1120_v38 = vrot.slane %v1000_v27, 1  ;;  %v1674_v39 = vsel %vm501_vm0, %v1671_v54, %v1673_v5 }
  0xf0   : > { %v638_v32 = vadd.f32 %v564_v30, %v361_v43  ;;  %v809_v11 = vsel %vm746_vm1, %v807_v25, %v808_v35  ;;  %v1363_v7 = vrot.slane %v1243_v34, 2  ;;  %v1364_v60 = vrot.slane %v1244_v33, 2 }
  0xf1   : > { %v1438_v36 = vadd.f32 %v1362_v21, %v1194_v29  ;;  %v1555_v63 = vmul.f32 %v3286_v26, %v4273_v61  ;;  %v1918_v0 = vsel %vm746_vm1, %v1915_v2, %v1917_v9  ;;  %v4285_v40 = vmul.f32 %v3286_v26, %v4278_v44 }
  0xf2   : > { %v883_v52 = vadd.f32 %v809_v11, %v638_v32  ;;  %v1799_v16 = vmul.f32 %v3884_v1, %v4273_v61  ;;  %v1121_v46 = vsel %vm501_vm0, %v1119_v28, %v1120_v38  ;;  %v4292_v59 = vmul.f32 %v3884_v1, %v4278_v44 }
  0xf3   : > { %v1506_v23 = vadd.f32 %v1474_v58, %v1438_v36  ;;  %v1675_v54 = vrot.slane %v1555_v63, 1  ;;  %v1365_v62 = vsel %vm746_vm1, %v1363_v7, %v1364_v60  ;;  %v1475_v2 = vmul.f32 %v3275_v20, %v4273_v61 }
  0xf4   : > { %v951_v55 = vadd.f32 %v919_v47, %v883_v52  ;;  %v1676_v8 = vrot.slane %v4285_v40, 1  ;;  %v1919_v56 = vrot.slane %v1799_v16, 2  ;;  %v443_v58 = vmul.f32 %v3263_v13, %v4148_v45 }
  0xf5   : > { %v1750_v37 = vadd.f32 %v1674_v39, %v1506_v23  ;;  %v688_v49 = vmul.f32 %v3265_v14, %v4148_v45  ;;  %v1920_v9 = vrot.slane %v4292_v59, 2  ;;  %v362_v53 = vmul.f32 %v3261_v12, %v4117_v22 }
  0xf6   : > { %v1195_v5 = vadd.f32 %v1121_v46, %v951_v55  ;;  %v1001_v57 = vmul.f32 %v3271_v18, %v4233_v31  ;;  %v1677_v43 = vsel %vm501_vm0, %v1675_v54, %v1676_v8  ;;  %v565_v50 = vrot.slane %v443_v58, 1 }
  0xf7   : > { %v1994_v21 = vadd.f32 %v1918_v0, %v1750_v37  ;;  %v810_v41 = vrot.slane %v688_v49, 2  ;;  %v920_v45 = vmul.f32 %v3269_v17, %v4199_v15  ;;  %v1245_v3 = vmul.f32 %v3273_v19, %v4233_v31 }
  0xf8   : > { %v1439_v6 = vadd.f32 %v1365_v62, %v1195_v5  ;;  %v1122_v42 = vrot.slane %v1001_v57, 1  ;;  %v566_v22 = vsel %vm501_vm0, %v563_v48, %v565_v50  ;;  %v1557_v24 = vmul.f32 %v3286_v26, %v4309_v10 }
  0xf9   : > { %3002 = vmatmul.mubr.msk.f32.gmra.mrb[4].mxu1 %vm2004_vm2, %v1994_v21  ;;  %v811_v47 = vsel %vm746_vm1, %v808_v35, %v810_v41  ;;  %v1801_v25 = vmul.f32 %v3884_v1, %v4309_v10  ;;  %v1921_v34 = vsel %vm746_vm1, %v1919_v56, %v1920_v9  ;;  %v639_v29 = vadd.f32 %v566_v22, %v362_v53  ;;  %v4356_v21 = vld [vmem:[%s3258_s21 + $0x168] sm:$0xff]  ;;  %v4360_v41 = vld [vmem:[%s3258_s21 + $0x170] sm:$0xff] }
  0xfa   : > { %v1507_v27 = vadd.f32 %v1475_v2, %v1439_v6  ;;  %v1366_v30 = vrot.slane %v1245_v3, 2  ;;  %v1123_v28 = vsel %vm501_vm0, %v1120_v38, %v1122_v42  ;;  %v1476_v48 = vmul.f32 %v3275_v20, %v4278_v44 }
  0xfb   : > { %v1678_v33 = vrot.slane %v1557_v24, 1  ;;  %v444_v35 = vmul.f32 %v3263_v13, %v4195_v51  ;;  %v884_v11 = vadd.f32 %v811_v47, %v639_v29  ;;  %v1922_v7 = vrot.slane %v1801_v25, 2 }
  0xfc   : > { %v1751_v32 = vadd.f32 %v1677_v43, %v1507_v27  ;;  %v4332_v36 = vmul.f32 %v3263_v13, %v4199_v15  ;;  %v1367_v39 = vsel %vm746_vm1, %v1364_v60, %v1366_v30  ;;  %v363_v63 = vmul.f32 %v3261_v12, %v4195_v51 }
  0xfd   : > { %v567_v38 = vrot.slane %v444_v35, 1  ;;  %v689_v0 = vmul.f32 %v3265_v14, %v4195_v51  ;;  %v952_v40 = vadd.f32 %v920_v45, %v884_v11  ;;  %v690_v23 = vmul.f32 %v3265_v14, %v4199_v15 }
  0xfe   : > { %v1995_v52 = vadd.f32 %v1921_v34, %v1751_v32  ;;  %v568_v16 = vrot.slane %v4332_v36, 1  ;;  %v921_v54 = vmul.f32 %v3269_v17, %v4273_v61  ;;  %v1002_v60 = vmul.f32 %v3271_v18, %v4273_v61 }
  0xff   : > { %v812_v46 = vrot.slane %v689_v0, 2  ;;  %v1003_v55 = vmul.f32 %v3271_v18, %v4278_v44  ;;  %v1196_v51 = vadd.f32 %v1123_v28, %v952_v40  ;;  %v813_v2 = vrot.slane %v690_v23, 2 }
 0x100   : > { %3004 = vmatprep.mubr.msk.f32.mxu1 %vm2004_vm2, %v1995_v52  ;;  %v569_v62 = vsel %vm501_vm0, %v567_v38, %v568_v16  ;;  %v1246_v37 = vmul.f32 %v3273_v19, %v4273_v61  ;;  %v1124_v58 = vrot.slane %v1002_v60, 1  ;;  %v1247_v5 = vmul.f32 %v3273_v19, %v4278_v44  ;;  %v4394_v38 = vld [vmem:[%s3258_s21 + $0x178] sm:$0x3] }
 0x101   : > { %v640_v56 = vadd.f32 %v569_v62, %v363_v63  ;;  %v1125_v49 = vrot.slane %v1003_v55, 1  ;;  %v1440_v53 = vadd.f32 %v1367_v39, %v1196_v51  ;;  %v1679_v57 = vsel %vm501_vm0, %v1676_v8, %v1678_v33 }
 0x102   : > { %v814_v43 = vsel %vm746_vm1, %v812_v46, %v813_v2  ;;  %v1368_v50 = vrot.slane %v1246_v37, 2  ;;  %v1369_v42 = vrot.slane %v1247_v5, 2  ;;  %v1558_v3 = vmul.f32 %v3286_v26, %v4356_v21 }
 0x103   : > { %v885_v6 = vadd.f32 %v814_v43, %v640_v56  ;;  %v1126_v45 = vsel %vm501_vm0, %v1124_v58, %v1125_v49  ;;  %v1508_v22 = vadd.f32 %v1476_v48, %v1440_v53  ;;  %v4367_v47 = vmul.f32 %v3286_v26, %v4360_v41 }
 0x104   : > { %v1802_v8 = vmul.f32 %v3884_v1, %v4356_v21  ;;  %v4373_v24 = vmul.f32 %v3884_v1, %v4360_v41  ;;  %v1923_v25 = vsel %vm746_vm1, %v1920_v9, %v1922_v7  ;;  %v1370_v34 = vsel %vm746_vm1, %v1368_v50, %v1369_v42 }
 0x105   : > { %v953_v27 = vadd.f32 %v921_v54, %v885_v6  ;;  %v1477_v29 = vmul.f32 %v3275_v20, %v4356_v21  ;;  %v1752_v30 = vadd.f32 %v1679_v57, %v1508_v22  ;;  %v1680_v28 = vrot.slane %v1558_v3, 1 }
 0x106   : > { %v1681_v48 = vrot.slane %v4367_v47, 1  ;;  %v364_v33 = vmul.f32 %v3261_v12, %v4199_v15  ;;  %v1924_v32 = vrot.slane %v1802_v8, 2  ;;  %v446_v59 = vmul.f32 %v3263_v13, %v4233_v31 }
 0x107   : > { %v1197_v35 = vadd.f32 %v1126_v45, %v953_v27  ;;  %v691_v9 = vmul.f32 %v3265_v14, %v4233_v31  ;;  %v1996_v11 = vadd.f32 %v1923_v25, %v1752_v30  ;;  %v1925_v7 = vrot.slane %v4373_v24, 2 }
 0x108   : > { %v922_v36 = vmul.f32 %v3269_v17, %v4278_v44  ;;  %v1004_v39 = vmul.f32 %v3271_v18, %v4309_v10  ;;  %v570_v15 = vrot.slane %v446_v59, 1  ;;  %v1248_v52 = vmul.f32 %v3273_v19, %v4309_v10 }
 0x109   : > { %v1441_v63 = vadd.f32 %v1370_v34, %v1197_v35  ;;  %v815_v0 = vrot.slane %v691_v9, 2  ;;  %3005 = vmatmul.mubr.msk.f32.gmra.mrb[6].mxu1 %vm2004_vm2, %v1996_v11  ;;  %v1682_v31 = vsel %vm501_vm0, %v1680_v28, %v1681_v48  ;;  %v1560_v23 = vmul.f32 %v3286_v26, %v4394_v38 }
 0x10a   : > { %v1127_v40 = vrot.slane %v1004_v39, 1  ;;  %v1804_v46 = vmul.f32 %v3884_v1, %v4394_v38  ;;  %v4404_v54 = vpop.f32.mrb[0].mxu0  ;;  %v571_v55 = vsel %vm501_vm0, %v568_v16, %v570_v15  ;;  %v1371_v62 = vrot.slane %v1248_v52, 2  ;;  %v4443_v15 = vld [vmem:[%s3258_s21 + $0x188] sm:$0xff] }
 0x10b   : > { %v1509_v60 = vadd.f32 %v1477_v29, %v1441_v63  ;;  %v816_v51 = vsel %vm746_vm1, %v813_v2, %v815_v0  ;;  %v4408_v37 = vpop.f32.mrb[1].mxu0  ;;  %v1926_v56 = vsel %vm746_vm1, %v1924_v32, %v1925_v7  ;;  %v641_v58 = vadd.f32 %v571_v55, %v364_v33  ;;  %v4438_v32 = vld [vmem:[%s3258_s21 + $0x180] sm:$0xff] }
 0x10c   : > { %v1128_v5 = vsel %vm501_vm0, %v1125_v49, %v1127_v40  ;;  %v1478_v53 = vmul.f32 %v3275_v20, %v4360_v41  ;;  %v1683_v1 = vrot.slane %v1560_v23, 1  ;;  %v1927_v43 = vrot.slane %v1804_v46, 2  ;;  %v4455_v46 = vld [vmem:[%s5014_s1 + $0x8] ss:$0 sm:$0xff] }
 0x10d   : > { %v1753_v57 = vadd.f32 %v1682_v31, %v1509_v60  ;;  %v447_v50 = vmul.f32 %v3263_v13, %v4273_v61  ;;  %v886_v16 = vadd.f32 %v816_v51, %v641_v58  ;;  %v1372_v2 = vsel %vm746_vm1, %v1369_v42, %v1371_v62 }
 0x10e   : > { %v365_v6 = vmul.f32 %v3261_v12, %v4273_v61  ;;  %v448_v45 = vmul.f32 %v3263_v13, %v4278_v44  ;;  %v692_v22 = vmul.f32 %v3265_v14, %v4273_v61  ;;  %v693_v47 = vmul.f32 %v3265_v14, %v4278_v44 }
 0x10f   : > { %v1997_v3 = vadd.f32 %v1926_v56, %v1753_v57  ;;  %v572_v49 = vrot.slane %v447_v50, 1  ;;  %v954_v8 = vadd.f32 %v922_v36, %v886_v16  ;;  %v923_v42 = vmul.f32 %v3269_v17, %v4356_v21 }
 0x110   : > { %v573_v24 = vrot.slane %v448_v45, 1  ;;  %v1005_v25 = vmul.f32 %v3271_v18, %v4356_v21  ;;  %v817_v27 = vrot.slane %v692_v22, 2  ;;  %v818_v34 = vrot.slane %v693_v47, 2 }
 0x111   : > { %3007 = vmatprep.mubr.msk.f32.mxu1 %vm2004_vm2, %v1997_v3  ;;  %v1006_v29 = vmul.f32 %v3271_v18, %v4360_v41  ;;  %v1249_v61 = vmul.f32 %v3273_v19, %v4356_v21  ;;  %v1198_v30 = vadd.f32 %v1128_v5, %v954_v8  ;;  %v1250_v35 = vmul.f32 %v3273_v19, %v4360_v41  ;;  %v4479_v8 = vld [vmem:[%s3258_s21 + $0x190] sm:$0x3] }
 0x112   : > { %v574_v28 = vsel %vm501_vm0, %v572_v49, %v573_v24  ;;  %v1129_v33 = vrot.slane %v1005_v25, 1  ;;  %v819_v9 = vsel %vm746_vm1, %v817_v27, %v818_v34  ;;  %v1684_v63 = vsel %vm501_vm0, %v1681_v48, %v1683_v1 }
 0x113   : > { %v642_v59 = vadd.f32 %v574_v28, %v365_v6  ;;  %v1130_v11 = vrot.slane %v1006_v29, 1  ;;  %v1373_v36 = vrot.slane %v1249_v61, 2  ;;  %v1442_v39 = vadd.f32 %v1372_v2, %v1198_v30 }
 0x114   : > { %v1374_v0 = vrot.slane %v1250_v35, 2  ;;  %v1561_v52 = vmul.f32 %v3286_v26, %v4438_v32  ;;  %v1928_v31 = vsel %vm746_vm1, %v1925_v7, %v1927_v43  ;;  %v4450_v23 = vmul.f32 %v3286_v26, %v4443_v15 }
 0x115   : > { %v887_v40 = vadd.f32 %v819_v9, %v642_v59  ;;  %v1805_v48 = vmul.f32 %v4455_v46, %v4438_v32  ;;  %v1510_v60 = vadd.f32 %v1478_v53, %v1442_v39  ;;  %v1131_v55 = vsel %vm501_vm0, %v1129_v33, %v1130_v11 }
 0x116   : > { %v1685_v51 = vrot.slane %v1561_v52, 1  ;;  %v4462_v7 = vmul.f32 %v4455_v46, %v4443_v15  ;;  %v1375_v56 = vsel %vm746_vm1, %v1373_v36, %v1374_v0  ;;  %v1479_v58 = vmul.f32 %v3275_v20, %v4438_v32 }
 0x117   : > { %v955_v62 = vadd.f32 %v923_v42, %v887_v40  ;;  %v1686_v5 = vrot.slane %v4450_v23, 1  ;;  %v1754_v57 = vadd.f32 %v1684_v63, %v1510_v60  ;;  %v1929_v1 = vrot.slane %v1805_v48, 2 }
 0x118   : > { %v449_v53 = vmul.f32 %v3263_v13, %v4309_v10  ;;  %v694_v43 = vmul.f32 %v3265_v14, %v4309_v10  ;;  %v1930_v16 = vrot.slane %v4462_v7, 2  ;;  %v366_v2 = vmul.f32 %v3261_v12, %v4278_v44 }
 0x119   : > { %v1199_v50 = vadd.f32 %v1131_v55, %v955_v62  ;;  %v1007_v6 = vmul.f32 %v3271_v18, %v4394_v38  ;;  %v1998_v45 = vadd.f32 %v1928_v31, %v1754_v57  ;;  %v1687_v3 = vsel %vm501_vm0, %v1685_v51, %v1686_v5 }
 0x11a   : > { %v575_v49 = vrot.slane %v449_v53, 1  ;;  %v820_v22 = vrot.slane %v694_v43, 2  ;;  %v924_v10 = vmul.f32 %v3269_v17, %v4360_v41  ;;  %v1251_v25 = vmul.f32 %v3273_v19, %v4394_v38  ;;  %v328_v53 = vld [vmem:[%s3258_s21 + $0x198] sm:$0xff] }
 0x11b   : > { %v1443_v47 = vadd.f32 %v1375_v56, %v1199_v50  ;;  %v1132_v42 = vrot.slane %v1007_v6, 1  ;;  %3008 = vmatmul.mubr.msk.f32.gmra.mrb[8].mxu1 %vm2004_vm2, %v1998_v45  ;;  %v1563_v29 = vmul.f32 %v3286_v26, %v4479_v8  ;;  %v1807_v61 = vmul.f32 %v4455_v46, %v4479_v8  ;;  %v329_v6 = vld [vmem:[%s3258_s21 + $0x1a0] sm:$0xff] }
 0x11c   : > { %v576_v44 = vsel %vm501_vm0, %v573_v24, %v575_v49  ;;  %v821_v27 = vsel %vm746_vm1, %v818_v34, %v820_v22  ;;  %v1931_v28 = vsel %vm746_vm1, %v1929_v1, %v1930_v16  ;;  %v1376_v35 = vrot.slane %v1251_v25, 2  ;;  %v4495_v59 = vpop.f32.mrb[2].mxu0 }
 0x11d   : > { %v1511_v30 = vadd.f32 %v1479_v58, %v1443_v47  ;;  %v643_v33 = vadd.f32 %v576_v44, %v366_v2  ;;  %v1133_v9 = vsel %vm501_vm0, %v1130_v11, %v1132_v42  ;;  %v1480_v24 = vmul.f32 %v3275_v20, %v4443_v15  ;;  %v4502_v39 = vpop.f32.mrb[3].mxu0 }
 0x11e   : > { %v1688_v34 = vrot.slane %v1563_v29, 1  ;;  %v450_v36 = vmul.f32 %v3263_v13, %v4356_v21  ;;  %v1932_v31 = vrot.slane %v1807_v61, 2  ;;  %v451_v40 = vmul.f32 %v3263_v13, %v4360_v41 }
 0x11f   : > { %v1755_v63 = vadd.f32 %v1687_v3, %v1511_v30  ;;  %v888_v52 = vadd.f32 %v821_v27, %v643_v33  ;;  %v1377_v23 = vsel %vm746_vm1, %v1374_v0, %v1376_v35  ;;  %v367_v11 = vmul.f32 %v3261_v12, %v4356_v21 }
 0x120   : > { %v577_v48 = vrot.slane %v450_v36, 1  ;;  %v695_v60 = vmul.f32 %v3265_v14, %v4356_v21  ;;  %v578_v62 = vrot.slane %v451_v40, 1  ;;  %v696_v56 = vmul.f32 %v3265_v14, %v4360_v41 }
 0x121   : > { %v1999_v55 = vadd.f32 %v1931_v28, %v1755_v63  ;;  %v956_v51 = vadd.f32 %v924_v10, %v888_v52  ;;  %v925_v57 = vmul.f32 %v3269_v17, %v4438_v32  ;;  %v1008_v0 = vmul.f32 %v3271_v18, %v4438_v32 }
 0x122   : > { %v822_v58 = vrot.slane %v695_v60, 2  ;;  %v4519_v1 = vmul.f32 %v3271_v18, %v4443_v15  ;;  %v579_v43 = vsel %vm501_vm0, %v577_v48, %v578_v62  ;;  %v823_v50 = vrot.slane %v696_v56, 2 }
 0x123   : > { %3010 = vmatprep.mubr.msk.f32.mxu1 %vm2004_vm2, %v1999_v55  ;;  %v1200_v21 = vadd.f32 %v1133_v9, %v956_v51  ;;  %v1252_v2 = vmul.f32 %v3273_v19, %v4438_v32  ;;  %v644_v45 = vadd.f32 %v579_v43, %v367_v11  ;;  %v1134_v3 = vrot.slane %v1008_v0, 1  ;;  %v330_v55 = vld [vmem:[%s3258_s21 + $0x1a8] sm:$0x3]  ;;  %s3093_s21 = scalar_lea.vmem %s3092_s20, 8192 }
 0x124   : > { %v1135_v49 = vrot.slane %v4519_v1, 1  ;;  %v1253_v22 = vmul.f32 %v3273_v19, %v4443_v15  ;;  %v1689_v10 = vsel %vm501_vm0, %v1686_v5, %v1688_v34  ;;  %v824_v42 = vsel %vm746_vm1, %v822_v58, %v823_v50  ;;  %p3095_p1 = scmp.lt.s32.totalorder %s3093_s21, %s3087_s18 }
 0x125   : > { %v1444_v47 = vadd.f32 %v1377_v23, %v1200_v21  ;;  %v1378_v25 = vrot.slane %v1252_v2, 2  ;;  %v889_v44 = vadd.f32 %v824_v42, %v644_v45  ;;  %v1564_v32 = vmul.f32 %v3286_v26, %v328_v53 }
 0x126   : > { %v1136_v27 = vsel %vm501_vm0, %v1134_v3, %v1135_v49  ;;  %v1379_v29 = vrot.slane %v1253_v22, 2  ;;  %v4535_v30 = vmul.f32 %v3286_v26, %v329_v6  ;;  %v1808_v28 = vmul.f32 %v4455_v46, %v328_v53  ;;  %p3096_p2 = por %p3095_p1, %p3094_p0 }
 0x127   : > { %v1512_v61 = vadd.f32 %v1480_v24, %v1444_v47  ;;  %v4539_v33 = vmul.f32 %v4455_v46, %v329_v6  ;;  %v1933_v5 = vsel %vm746_vm1, %v1930_v16, %v1932_v31  ;;  %v957_v35 = vadd.f32 %v925_v57, %v889_v44 }
 0x128   : > { %v1481_v9 = vmul.f32 %v3275_v20, %v328_v53  ;;  %v1380_v36 = vsel %vm746_vm1, %v1378_v25, %v1379_v29  ;;  %v1690_v24 = vrot.slane %v1564_v32, 1  ;;  %v1691_v63 = vrot.slane %v4535_v30, 1  ;;  %p3097_p3 = pnand %p3096_p2, %p3090_p13 }
 0x129   : > { %v1756_v34 = vadd.f32 %v1689_v10, %v1512_v61  ;;  %v1201_v52 = vadd.f32 %v1136_v27, %v957_v35  ;;  %v368_v40 = vmul.f32 %v3261_v12, %v4360_v41  ;;  %v452_v23 = vmul.f32 %v3263_v13, %v4394_v38 }
 0x12a   : > { %v697_v7 = vmul.f32 %v3265_v14, %v4394_v38  ;;  %v1934_v31 = vrot.slane %v1808_v28, 2  ;;  %v1935_v11 = vrot.slane %v4539_v33, 2  ;;  %v1010_v48 = vmul.f32 %v3271_v18, %v4479_v8 }
 0x12b   : > { %v2000_v16 = vadd.f32 %v1933_v5, %v1756_v34  ;;  %v1445_v60 = vadd.f32 %v1380_v36, %v1201_v52  ;;  %v580_v51 = vrot.slane %v452_v23, 1  ;;  %v1254_v12 = vmul.f32 %v3273_v19, %v4479_v8 }
 0x12c   : > { %v825_v56 = vrot.slane %v697_v7, 2  ;;  %v1692_v13 = vsel %vm501_vm0, %v1690_v24, %v1691_v63  ;;  %v1137_v41 = vrot.slane %v1010_v48, 1  ;;  %v926_v18 = vmul.f32 %v3269_v17, %v4443_v15 }
 0x12d   : > { %3011 = vmatmul.mubr.msk.f32.gmra.mrb[10].mxu1 %vm2004_vm2, %v2000_v16  ;;  %v1513_v14 = vadd.f32 %v1481_v9, %v1445_v60  ;;  %v581_v38 = vsel %vm501_vm0, %v578_v62, %v580_v51  ;;  %v1936_v0 = vsel %vm746_vm1, %v1934_v31, %v1935_v11  ;;  %v1381_v21 = vrot.slane %v1254_v12, 2 }
 0x12e   : > { %v826_v58 = vsel %vm746_vm1, %v823_v50, %v825_v56  ;;  %v4565_v57 = vpop.f32.mrb[4].mxu0  ;;  %v645_v1 = vadd.f32 %v581_v38, %v368_v40  ;;  %v1566_v19 = vmul.f32 %v3286_v26, %v330_v55  ;;  %v1482_v43 = vmul.f32 %v3275_v20, %v329_v6 }
 0x12f   : > { %v4569_v8 = vpop.f32.mrb[5].mxu0  ;;  %v1757_v53 = vadd.f32 %v1692_v13, %v1513_v14  ;;  %v2399_v62 = vmul.f32 %v4404_v54, %v4404_v54  ;;  %v1138_v17 = vsel %vm501_vm0, %v1135_v49, %v1137_v41  ;;  %v1810_v15 = vmul.f32 %v4455_v46, %v330_v55 }
 0x130   : > { %v890_v50 = vadd.f32 %v826_v58, %v645_v1  ;;  %v2329_v2 = vsel %vm2327_vm3, %v4404_v54, 0.0  ;;  %v2328_v3 = vsel %vm2327_vm3, %v4408_v37, 0.0  ;;  %v2398_v20 = vmul.f32 %v4408_v37, %v4408_v37 }
 0x131   : > { %v2001_v45 = vadd.f32 %v1936_v0, %v1757_v53  ;;  %v2431_v26 = vsel %vm2327_vm3, %v2399_v62, 0.0  ;;  %v1382_v22 = vsel %vm746_vm1, %v1379_v29, %v1381_v21  ;;  %v1693_v47 = vrot.slane %v1566_v19, 1 }
 0x132   : > { %v958_v6 = vadd.f32 %v926_v18, %v890_v50  ;;  %v2330_v10 = vadd.f32 %v2329_v2, %v2328_v3  ;;  %v2430_v46 = vsel %vm2327_vm3, %v2398_v20, 0.0  ;;  %v2401_v49 = vmul.f32 %v4495_v59, %v4495_v59 }
 0x133   : > { %3013 = vmatprep.mubr.msk.f32.mxu1 %vm2004_vm2, %v2001_v45  ;;  %v2331_v42 = vsel %vm2327_vm3, %v4502_v39, 0.0  ;;  %v2400_v25 = vmul.f32 %v4502_v39, %v4502_v39  ;;  %v1937_v27 = vrot.slane %v1810_v15, 2  ;;  %v2432_v32 = vadd.f32 %v2431_v26, %v2430_v46 }
 0x134   : > { %v1202_v44 = vadd.f32 %v1138_v17, %v958_v6  ;;  %v2332_v61 = vadd.f32 %v2331_v42, %v2330_v10  ;;  %v2333_v29 = vsel %vm2327_vm3, %v4495_v59, 0.0  ;;  %v2335_v28 = vsel %vm2327_vm3, %v4569_v8, 0.0 }
 0x135   : > { %v2433_v30 = vsel %vm2327_vm3, %v2400_v25, 0.0  ;;  %v2402_v33 = vmul.f32 %v4569_v8, %v4569_v8  ;;  %v1694_v34 = vsel %vm501_vm0, %v1691_v63, %v1693_v47  ;;  %v2435_v36 = vsel %vm2327_vm3, %v2401_v49, 0.0 }
 0x136   : > { %v1446_v5 = vadd.f32 %v1382_v22, %v1202_v44  ;;  %v2434_v35 = vadd.f32 %v2433_v30, %v2432_v32  ;;  %v2334_v9 = vadd.f32 %v2333_v29, %v2332_v61  ;;  %v2403_v24 = vmul.f32 %v4565_v57, %v4565_v57 }
 0x137   : > { %v2437_v52 = vsel %vm2327_vm3, %v2402_v33, 0.0  ;;  %v1938_v16 = vsel %vm746_vm1, %v1935_v11, %v1937_v27  ;;  %v2337_v31 = vsel %vm2327_vm3, %v4565_v57, 0.0  ;;  %v3151_v33 = vmov 0.0|0.0  }
 0x138   : > { %v1514_v40 = vadd.f32 %v1482_v43, %v1446_v5  ;;  %v2336_v23 = vadd.f32 %v2335_v28, %v2334_v9  ;;  %v2436_v7 = vadd.f32 %v2435_v36, %v2434_v35  ;;  %v2439_v63 = vsel %vm2327_vm3, %v2403_v24, 0.0  ;;  %3030 = vmatprep.subr.bf16.mxu1 %v3151_v33 }
 0x13a   : > { %v1758_v48 = vadd.f32 %v1694_v34, %v1514_v40  ;;  %v2438_v60 = vadd.f32 %v2437_v52, %v2436_v7  ;;  %v2338_v55 = vadd.f32 %v2337_v31, %v2336_v23  ;;  %v2507_v31 = vld [vmem:[%s5019_s6 + $0x8] sm:$0xff] }
 0x13c   : > { %v2002_v51 = vadd.f32 %v1938_v16, %v1758_v48  ;;  %v2440_v56 = vadd.f32 %v2439_v63, %v2438_v60  ;;  %v2506_v16 = vld [vmem:[%s5019_s6] sm:$0xff] }
 0x13d   : > { %v4671_v48 = vpack.c.bf16 %v2507_v31, %v2506_v16 }
 0x13e   : > { %3014 = vmatmul.mubr.msk.f32.gmra.mrb[12].mxu1 %vm2004_vm2, %v2002_v51 }
 0x13f   : > { %3032 = vmatpush3.bf16.msra.mxu1 %v4671_v48 }
 0x140   : > { %v4609_v12 = vpop.f32.mrb[6].mxu0  ;;  %3033 = vmatprep.subr.bf16.mxu1 %v3151_v33 }
 0x141   : > { %v4611_v13 = vpop.f32.mrb[7].mxu0  ;;  %v2405_v41 = vmul.f32 %v4609_v12, %v4609_v12  ;;  %v2341_v58 = vsel %vm2327_vm3, %v4609_v12, 0.0 }
 0x142   : > { %v2339_v11 = vsel %vm2327_vm3, %v4611_v13, 0.0  ;;  %v2404_v14 = vmul.f32 %v4611_v13, %v4611_v13 }
 0x143   : > { %v2340_v38 = vadd.f32 %v2339_v11, %v2338_v55  ;;  %v2443_v21 = vsel %vm2327_vm3, %v2405_v41, 0.0 }
 0x144   : > { %v2441_v18 = vsel %vm2327_vm3, %v2404_v14, 0.0 }
 0x145   : > { %v2442_v0 = vadd.f32 %v2441_v18, %v2440_v56  ;;  %v2342_v1 = vadd.f32 %v2341_v58, %v2340_v38 }
 0x147   : > { %v2444_v19 = vadd.f32 %v2443_v21, %v2442_v0 }
 0x150   : > { %v4623_v53 = vpop.f32.mrb[8].mxu0 }
 0x151   : > { %v4625_v43 = vpop.f32.mrb[9].mxu0  ;;  %v2407_v62 = vmul.f32 %v4623_v53, %v4623_v53  ;;  %v2345_v2 = vsel %vm2327_vm3, %v4623_v53, 0.0 }
 0x152   : > { %v2343_v50 = vsel %vm2327_vm3, %v4625_v43, 0.0  ;;  %v2406_v17 = vmul.f32 %v4625_v43, %v4625_v43 }
 0x153   : > { %v2344_v15 = vadd.f32 %v2343_v50, %v2342_v1  ;;  %v2447_v20 = vsel %vm2327_vm3, %v2407_v62, 0.0 }
 0x154   : > { %v2445_v45 = vsel %vm2327_vm3, %v2406_v17, 0.0 }
 0x155   : > { %v2446_v26 = vadd.f32 %v2445_v45, %v2444_v19  ;;  %v2346_v3 = vadd.f32 %v2345_v2, %v2344_v15 }
 0x157   : > { %v2448_v6 = vadd.f32 %v2447_v20, %v2446_v26 }
 0x162   : > { %v4637_v22 = vpop.f32.mrb[10].mxu0 }
 0x163   : > { %v4639_v47 = vpop.f32.mrb[11].mxu0  ;;  %v2409_v10 = vmul.f32 %v4637_v22, %v4637_v22  ;;  %v2349_v25 = vsel %vm2327_vm3, %v4637_v22, 0.0 }
 0x164   : > { %v2347_v46 = vsel %vm2327_vm3, %v4639_v47, 0.0  ;;  %v2408_v49 = vmul.f32 %v4639_v47, %v4639_v47 }
 0x165   : > { %v2348_v42 = vadd.f32 %v2347_v46, %v2346_v3  ;;  %v2451_v61 = vsel %vm2327_vm3, %v2409_v10, 0.0 }
 0x166   : > { %v2449_v44 = vsel %vm2327_vm3, %v2408_v49, 0.0 }
 0x167   : > { %v2450_v27 = vadd.f32 %v2449_v44, %v2448_v6  ;;  %v2350_v32 = vadd.f32 %v2349_v25, %v2348_v42  ;;  %v3153_v6 = vmov 0.0  }
 0x168   : > { %3020 = vmatprep.mubr.msk.f32.mxu1 %vm3152_vm4, %v3153_v6 }
 0x169   : > { %v2452_v29 = vadd.f32 %v2451_v61, %v2450_v27 }
 0x174   : > { %v4651_v30 = vpop.f32.mrb[12].mxu0 }
 0x175   : > { %v4653_v28 = vpop.f32.mrb[13].mxu0  ;;  %v2411_v5 = vmul.f32 %v4651_v30, %v4651_v30  ;;  %v2353_v36 = vsel %vm2327_vm3, %v4651_v30, 0.0 }
 0x176   : > { %v2351_v35 = vsel %vm2327_vm3, %v4653_v28, 0.0  ;;  %v2410_v9 = vmul.f32 %v4653_v28, %v4653_v28 }
 0x177   : > { %v2352_v34 = vadd.f32 %v2351_v35, %v2350_v32  ;;  %v2455_v23 = vsel %vm2327_vm3, %v2411_v5, 0.0 }
 0x178   : > { %v2453_v24 = vsel %vm2327_vm3, %v2410_v9, 0.0 }
 0x179   : > { %v2454_v52 = vadd.f32 %v2453_v24, %v2452_v29  ;;  %v2354_v40 = vadd.f32 %v2353_v36, %v2352_v34 }
 0x17b   : > { %v2456_v7 = vadd.f32 %v2455_v23, %v2454_v52 }
 0x186   : > { %v4673_v60 = vpop.f32.mrb[14].mxu0 }
 0x187   : > { %v4676_v55 = vpop.f32.mrb[15].mxu0  ;;  %v2413_v63 = vmul.f32 %v4673_v60, %v4673_v60  ;;  %v2357_v11 = vsel %vm2327_vm3, %v4673_v60, 0.0 }
 0x188   : > { %v2355_v51 = vsel %vm2327_vm3, %v4676_v55, 0.0  ;;  %v2412_v56 = vmul.f32 %v4676_v55, %v4676_v55 }
 0x189   : > { %v2356_v41 = vadd.f32 %v2355_v51, %v2354_v40  ;;  %v2459_v18 = vsel %vm2327_vm3, %v2413_v63, 0.0 }
 0x18a   : > { %v2457_v14 = vsel %vm2327_vm3, %v2412_v56, 0.0 }
 0x18b   : > { %v2458_v38 = vadd.f32 %v2457_v14, %v2456_v7  ;;  %v2358_v58 = vadd.f32 %v2357_v11, %v2356_v41 }
 0x18d   : > { %v2460_v0 = vadd.f32 %v2459_v18, %v2458_v38 }
 0x196   : > { %v4688_v1 = vpop.f32.mrb[16].mxu0 }
 0x197   : > { %v4690_v21 = vpop.f32.mrb[17].mxu0  ;;  %v2415_v19 = vmul.f32 %v4688_v1, %v4688_v1  ;;  %v2361_v15 = vsel %vm2327_vm3, %v4688_v1, 0.0 }
 0x198   : > { %v2359_v62 = vsel %vm2327_vm3, %v4690_v21, 0.0  ;;  %v2414_v50 = vmul.f32 %v4690_v21, %v4690_v21 }
 0x199   : > { %v2360_v17 = vadd.f32 %v2359_v62, %v2358_v58  ;;  %v2463_v3 = vsel %vm2327_vm3, %v2415_v19, 0.0 }
 0x19a   : > { %v2461_v2 = vsel %vm2327_vm3, %v2414_v50, 0.0 }
 0x19b   : > { %v2362_v45 = vadd.f32 %v2361_v15, %v2360_v17  ;;  %v2462_v26 = vadd.f32 %v2461_v2, %v2460_v0 }
 0x19d   : > { %v2464_v20 = vadd.f32 %v2463_v3, %v2462_v26 }
 0x1a8   : > { %v4704_v10 = vpop.f32.mrb[0].mxu1 }
 0x1a9   : > { %v4706_v46 = vpop.f32.mrb[1].mxu1  ;;  %v2417_v49 = vmul.f32 %v4704_v10, %v4704_v10  ;;  %v2365_v27 = vsel %vm2327_vm3, %v4704_v10, 0.0 }
 0x1aa   : > { %v2363_v42 = vsel %vm2327_vm3, %v4706_v46, 0.0  ;;  %v2416_v25 = vmul.f32 %v4706_v46, %v4706_v46 }
 0x1ab   : > { %v2364_v44 = vadd.f32 %v2363_v42, %v2362_v45  ;;  %v2467_v33 = vsel %vm2327_vm3, %v2417_v49, 0.0 }
 0x1ac   : > { %v2465_v32 = vsel %vm2327_vm3, %v2416_v25, 0.0 }
 0x1ad   : > { %v2466_v61 = vadd.f32 %v2465_v32, %v2464_v20  ;;  %v2366_v29 = vadd.f32 %v2365_v27, %v2364_v44 }
 0x1af   : > { %v2468_v5 = vadd.f32 %v2467_v33, %v2466_v61 }
 0x1ba   : > { %v4718_v35 = vpop.f32.mrb[2].mxu1 }
 0x1bb   : > { %v4720_v9 = vpop.f32.mrb[3].mxu1  ;;  %v2419_v34 = vmul.f32 %v4718_v35, %v4718_v35  ;;  %v2369_v40 = vsel %vm2327_vm3, %v4718_v35, 0.0 }
 0x1bc   : > { %v2367_v36 = vsel %vm2327_vm3, %v4720_v9, 0.0  ;;  %v2418_v24 = vmul.f32 %v4720_v9, %v4720_v9 }
 0x1bd   : > { %v2368_v52 = vadd.f32 %v2367_v36, %v2366_v29  ;;  %v2471_v31 = vsel %vm2327_vm3, %v2419_v34, 0.0 }
 0x1be   : > { %v2469_v23 = vsel %vm2327_vm3, %v2418_v24, 0.0 }
 0x1bf   : > { %v2470_v7 = vadd.f32 %v2469_v23, %v2468_v5  ;;  %v2370_v16 = vadd.f32 %v2369_v40, %v2368_v52 }
 0x1c1   : > { %v2472_v63 = vadd.f32 %v2471_v31, %v2470_v7 }
 0x1cc   : > { %v4732_v51 = vpop.f32.mrb[4].mxu1 }
 0x1cd   : > { %v4734_v56 = vpop.f32.mrb[5].mxu1  ;;  %v2421_v41 = vmul.f32 %v4732_v51, %v4732_v51  ;;  %v2373_v58 = vsel %vm2327_vm3, %v4732_v51, 0.0 }
 0x1ce   : > { %v2371_v11 = vsel %vm2327_vm3, %v4734_v56, 0.0  ;;  %v2420_v14 = vmul.f32 %v4734_v56, %v4734_v56 }
 0x1cf   : > { %v2372_v38 = vadd.f32 %v2371_v11, %v2370_v16  ;;  %v2475_v62 = vsel %vm2327_vm3, %v2421_v41, 0.0 }
 0x1d0   : > { %v2473_v18 = vsel %vm2327_vm3, %v2420_v14, 0.0 }
 0x1d1   : > { %v2474_v0 = vadd.f32 %v2473_v18, %v2472_v63  ;;  %v2374_v19 = vadd.f32 %v2373_v58, %v2372_v38 }
 0x1d3   : > { %v2476_v50 = vadd.f32 %v2475_v62, %v2474_v0 }
 0x1dc   : > { %v4746_v17 = vpop.f32.mrb[6].mxu1 }
 0x1dd   : > { %v4748_v15 = vpop.f32.mrb[7].mxu1  ;;  %v2423_v2 = vmul.f32 %v4746_v17, %v4746_v17  ;;  %v2377_v20 = vsel %vm2327_vm3, %v4746_v17, 0.0 }
 0x1de   : > { %v2375_v45 = vsel %vm2327_vm3, %v4748_v15, 0.0  ;;  %v2422_v26 = vmul.f32 %v4748_v15, %v4748_v15 }
 0x1df   : > { %v2376_v3 = vadd.f32 %v2375_v45, %v2374_v19  ;;  %v2479_v44 = vsel %vm2327_vm3, %v2423_v2, 0.0 }
 0x1e0   : > { %v2477_v49 = vsel %vm2327_vm3, %v2422_v26, 0.0 }
 0x1e1   : > { %v2478_v42 = vadd.f32 %v2477_v49, %v2476_v50  ;;  %v2378_v25 = vadd.f32 %v2377_v20, %v2376_v3 }
 0x1e3   : > { %v2480_v27 = vadd.f32 %v2479_v44, %v2478_v42 }
 0x1ee   : > { %v4760_v32 = vpop.f32.mrb[8].mxu1 }
 0x1ef   : > { %v4762_v61 = vpop.f32.mrb[9].mxu1  ;;  %v2425_v29 = vmul.f32 %v4760_v32, %v4760_v32  ;;  %v2381_v36 = vsel %vm2327_vm3, %v4760_v32, 0.0 }
 0x1f0   : > { %v2379_v33 = vsel %vm2327_vm3, %v4762_v61, 0.0  ;;  %v2424_v5 = vmul.f32 %v4762_v61, %v4762_v61 }
 0x1f1   : > { %v2380_v34 = vadd.f32 %v2379_v33, %v2378_v25  ;;  %v2483_v23 = vsel %vm2327_vm3, %v2425_v29, 0.0 }
 0x1f2   : > { %v2481_v24 = vsel %vm2327_vm3, %v2424_v5, 0.0 }
 0x1f3   : > { %v2482_v52 = vadd.f32 %v2481_v24, %v2480_v27  ;;  %v2382_v40 = vadd.f32 %v2381_v36, %v2380_v34 }
 0x1f5   : > { %v2484_v7 = vadd.f32 %v2483_v23, %v2482_v52  ;;  %v2326_v23 = vld [vmem:[%s5016_s3] sm:$0x1] }
 0x200   : > { %v4774_v16 = vpop.f32.mrb[10].mxu1 }
 0x201   : > { %v4776_v31 = vpop.f32.mrb[11].mxu1  ;;  %v2427_v63 = vmul.f32 %v4774_v16, %v4774_v16  ;;  %v2385_v38 = vsel %vm2327_vm3, %v4774_v16, 0.0 }
 0x202   : > { %v2383_v41 = vsel %vm2327_vm3, %v4776_v31, 0.0  ;;  %v2426_v11 = vmul.f32 %v4776_v31, %v4776_v31 }
 0x203   : > { %v2384_v14 = vadd.f32 %v2383_v41, %v2382_v40  ;;  %v2487_v19 = vsel %vm2327_vm3, %v2427_v63, 0.0 }
 0x204   : > { %v2485_v58 = vsel %vm2327_vm3, %v2426_v11, 0.0 }
 0x205   : > { %v2486_v18 = vadd.f32 %v2485_v58, %v2484_v7  ;;  %v2386_v0 = vadd.f32 %v2385_v38, %v2384_v14  ;;  %v2501_v14 = vmul.f32 2.0, %v2326_v23 }
 0x207   : > { %v2488_v62 = vadd.f32 %v2487_v19, %v2486_v18 }
 0x211   : > { %v4788_v50 = vpop.f32.mrb[12].mxu1 }
 0x212   : > { %v4790_v2 = vpop.f32.mrb[13].mxu1  ;;  %v2429_v45 = vmul.f32 %v4788_v50, %v4788_v50  ;;  %v2389_v49 = vsel %vm2327_vm3, %v4788_v50, 0.0 }
 0x213   : > { %v2387_v26 = vsel %vm2327_vm3, %v4790_v2, 0.0  ;;  %v2428_v3 = vmul.f32 %v4790_v2, %v4790_v2 }
 0x214   : > { %v2388_v20 = vadd.f32 %v2387_v26, %v2386_v0  ;;  %v2491_v27 = vsel %vm2327_vm3, %v2429_v45, 0.0 }
 0x215   : > { %v2489_v42 = vsel %vm2327_vm3, %v2428_v3, 0.0 }
 0x216   : > { %v2390_v25 = vadd.f32 %v2389_v49, %v2388_v20  ;;  %v2490_v44 = vadd.f32 %v2489_v42, %v2488_v62  ;;  %v2504_v62 = vmul.f32 %v2326_v23, %v2326_v23 }
 0x218   : > { %v2391_v29 = vrot.slane %v2390_v25, 4  ;;  %v2492_v33 = vadd.f32 %v2491_v27, %v2490_v44 }
 0x21a   : > { %v2392_v5 = vadd.f32 %v2391_v29, %v2390_v25  ;;  %v2493_v34 = vrot.slane %v2492_v33, 4  ;;  %v2658_v29 = vld [vmem:[%s5017_s4] sm:$0x1] }
 0x21c   : > { %v2393_v36 = vrot.slane %v2392_v5, 2  ;;  %v2494_v24 = vadd.f32 %v2493_v34, %v2492_v33 }
 0x21e   : > { %v2394_v52 = vadd.f32 %v2393_v36, %v2392_v5  ;;  %v2495_v40 = vrot.slane %v2494_v24, 2 }
 0x220   : > { %v2395_v7 = vrot.slane %v2394_v52, 1  ;;  %v2496_v63 = vadd.f32 %v2495_v40, %v2494_v24 }
 0x222   : > { %v2396_v41 = vadd.f32 %v2395_v7, %v2394_v52  ;;  %v2497_v11 = vrot.slane %v2496_v63, 1 }
 0x224   : > { %v2397_v38 = vmul.f32 0.00390625, %v2396_v41  ;;  %v2498_v58 = vadd.f32 %v2497_v11, %v2496_v63 }
 0x226   : > { %v2499_v18 = vmul.f32 0.00390625, %v2498_v58  ;;  %v2500_v0 = vadd.f32 %v2397_v38, %v2326_v23  ;;  %v2502_v19 = vmul.f32 %v2501_v14, %v2397_v38 }
 0x228   : > { %3021 = vmatmul.mubr.msk.f32.vlgmr.msra.gmra.mrb[14].mxu1 %vm2327_vm3, %v2500_v0  ;;  %v2503_v45 = vadd.f32 %v2502_v19, %v2499_v18 }
 0x229   : > { %3035 = vmatpush3.bf16.msra.mxu1 %v4671_v48  ;;  %3027 = vmatprep.mubr.msk.f32.mxu1 %vm3152_vm4, %v3153_v6  ;;  %v2662_v6 = vld [vmem:[%s5018_s5] sm:$0x1] }
 0x22a   : > { %v2505_v26 = vadd.f32 %v2504_v62, %v2503_v45 }
 0x22c   : > { %3028 = vmatmul.mubr.msk.f32.vlgmr.msra.gmra.mrb[16].mxu1 %vm2327_vm3, %v2505_v26 }
 0x2fb   : > { %v2577_v3 = vpop.f32.mrb[14].mxu1 }
 0x2fc   : > { %v3022_v20 = vpop.f32.mrb[15].mxu1  ;;  %v2654_v49 = vmul.f32 %v2577_v3, %v2577_v3  ;;  %v2660_v48 = vsub.f32 %v2326_v23, %v2577_v3 }
 0x2ff   : > { %v2650_v42 = vpop.f32.mrb[16].mxu1 }
 0x300   : > { %v2655_v25 = vsub.f32 %v2650_v42, %v2654_v49  ;;  %v3029_v44 = vpop.f32.mrb[17].mxu1 }
 0x302   : > { %v2656_v27 = vadd.f32 1e-05, %v2655_v25 }
 0x304   : > { %3083 = vrsqrt.f32 %v2656_v27 }
 0x30e   : > { %v3084_v33 = vpop.eup %3083 }
 0x30f   : > { %v2659_v5 = vmul.f32 %v3084_v33, %v2658_v29 }
 0x311   : > { %v2661_v34 = vmul.f32 %v2660_v48, %v2659_v5  ;;  %v2668_v36 = vrot.slane %v2659_v5, %v3253_v4 }
 0x313   : > { %v2663_v24 = vadd.f32 %v2662_v6, %v2661_v34  ;;  %v2670_v52 = vmul.f32 %v2668_v36, %v4408_v37  ;;  %v2671_v40 = vmul.f32 %v4404_v54, %v2668_v36  ;;  %v2672_v7 = vmul.f32 %v2668_v36, %v4502_v39 }
 0x314   : > { %v2673_v63 = vmul.f32 %v4495_v59, %v2668_v36  ;;  %v2674_v41 = vmul.f32 %v2668_v36, %v4569_v8  ;;  %v2675_v23 = vmul.f32 %v4565_v57, %v2668_v36  ;;  %v2676_v11 = vmul.f32 %v2668_v36, %v4611_v13 }
 0x315   : > { %v2706_v14 = vrot.slane %v2663_v24, %v3253_v4  ;;  %v2677_v38 = vmul.f32 %v4609_v12, %v2668_v36  ;;  %v2678_v58 = vmul.f32 %v2668_v36, %v4625_v43  ;;  %v2679_v37 = vmul.f32 %v4623_v53, %v2668_v36 }
 0x316   : > { %v2680_v54 = vmul.f32 %v2668_v36, %v4639_v47  ;;  %v2681_v39 = vmul.f32 %v4637_v22, %v2668_v36  ;;  %v2682_v59 = vmul.f32 %v2668_v36, %v4653_v28  ;;  %v2683_v8 = vmul.f32 %v4651_v30, %v2668_v36 }
 0x317   : > { %v2684_v57 = vmul.f32 %v2668_v36, %v4676_v55  ;;  %v2685_v13 = vmul.f32 %v4673_v60, %v2668_v36  ;;  %v2686_v4 = vmul.f32 %v2668_v36, %v4690_v21  ;;  %v2687_v12 = vmul.f32 %v4688_v1, %v2668_v36 }
 0x318   : > { %v2688_v43 = vmul.f32 %v2668_v36, %v4706_v46  ;;  %v2689_v53 = vmul.f32 %v4704_v10, %v2668_v36  ;;  %v2690_v47 = vmul.f32 %v2668_v36, %v4720_v9  ;;  %v2691_v22 = vmul.f32 %v4718_v35, %v2668_v36 }
 0x319   : > { %v2692_v28 = vmul.f32 %v2668_v36, %v4734_v56  ;;  %v2693_v30 = vmul.f32 %v4732_v51, %v2668_v36  ;;  %v2694_v55 = vmul.f32 %v2668_v36, %v4748_v15  ;;  %v2695_v60 = vmul.f32 %v4746_v17, %v2668_v36 }
 0x31a   : > { %v2696_v21 = vmul.f32 %v2668_v36, %v4762_v61  ;;  %v2697_v1 = vmul.f32 %v4760_v32, %v2668_v36  ;;  %v2698_v46 = vmul.f32 %v2668_v36, %v4776_v31  ;;  %v2699_v10 = vmul.f32 %v4774_v16, %v2668_v36 }
 0x31b   : > { %v2700_v9 = vmul.f32 %v2668_v36, %v4790_v2  ;;  %v2701_v35 = vmul.f32 %v4788_v50, %v2668_v36  ;;  %v2708_v56 = vadd.f32 %v2706_v14, %v2670_v52  ;;  %v2709_v18 = vadd.f32 %v2706_v14, %v2671_v40 }
 0x31c   : > { %v2710_v51 = vadd.f32 %v2706_v14, %v2672_v7  ;;  %v2711_v15 = vadd.f32 %v2706_v14, %v2673_v63  ;;  %v2712_v0 = vadd.f32 %v2706_v14, %v2674_v41  ;;  %v2713_v17 = vadd.f32 %v2706_v14, %v2675_v23 }
 0x31d   : > { %v2714_v19 = vadd.f32 %v2706_v14, %v2676_v11  ;;  %v2715_v61 = vadd.f32 %v2706_v14, %v2677_v38  ;;  %v2716_v62 = vadd.f32 %v2706_v14, %v2678_v58  ;;  %v2717_v32 = vadd.f32 %v2706_v14, %v2679_v37 }
 0x31e   : > { %v2718_v45 = vadd.f32 %v2706_v14, %v2680_v54  ;;  %v2719_v31 = vadd.f32 %v2706_v14, %v2681_v39  ;;  %v2720_v26 = vadd.f32 %v2706_v14, %v2682_v59  ;;  %v2721_v16 = vadd.f32 %v2706_v14, %v2683_v8 }
 0x31f   : > { %v2722_v2 = vadd.f32 %v2706_v14, %v2684_v57  ;;  %v2723_v50 = vadd.f32 %v2706_v14, %v2685_v13  ;;  %v2724_v3 = vadd.f32 %v2706_v14, %v2686_v4  ;;  %v2725_v20 = vadd.f32 %v2706_v14, %v2687_v12 }
 0x320   : > { %v4853_v49 = vadd.f32 %v2706_v14, %v2688_v43  ;;  %v4855_v42 = vadd.f32 %v2706_v14, %v2689_v53  ;;  %v4857_v25 = vadd.f32 %v2706_v14, %v2690_v47  ;;  %v4859_v44 = vadd.f32 %v2706_v14, %v2691_v22 }
 0x321   : > { %v4861_v27 = vadd.f32 %v2706_v14, %v2692_v28  ;;  %v4863_v29 = vadd.f32 %v2706_v14, %v2693_v30  ;;  %v4865_v33 = vadd.f32 %v2706_v14, %v2694_v55  ;;  %v4867_v48 = vadd.f32 %v2706_v14, %v2695_v60 }
 0x322   : > { %v4869_v5 = vadd.f32 %v2706_v14, %v2696_v21  ;;  %v4871_v6 = vadd.f32 %v2706_v14, %v2697_v1  ;;  %v4873_v34 = vadd.f32 %v2706_v14, %v2698_v46  ;;  %v4875_v36 = vadd.f32 %v2706_v14, %v2699_v10 }
 0x323   : > { %v4877_v24 = vadd.f32 %v2706_v14, %v2700_v9  ;;  %v4879_v52 = vadd.f32 %v2706_v14, %v2701_v35  ;;  %v2740_v40 = vmax.f32 %v2708_v56, 0.0  ;;  %v2741_v7 = vmax.f32 %v2709_v18, 0.0 }
 0x324   : > { %v2742_v63 = vmax.f32 %v2710_v51, 0.0  ;;  %v2743_v41 = vmax.f32 %v2711_v15, 0.0  ;;  %v2744_v23 = vmax.f32 %v2712_v0, 0.0  ;;  %v2745_v11 = vmax.f32 %v2713_v17, 0.0 }
 0x325   : > { %v2746_v38 = vmax.f32 %v2714_v19, 0.0  ;;  %v2747_v58 = vmax.f32 %v2715_v61, 0.0  ;;  %v2748_v37 = vmax.f32 %v2716_v62, 0.0  ;;  %v2749_v54 = vmax.f32 %v2717_v32, 0.0  ;;  %2772 = vst.msk [vmem:[%s4881_s9] sm:$0xff] %vm2327_vm3, %v2740_v40  ;;  %2773 = vst.msk [vmem:[%s4881_s9 + $0x8] sm:$0xff] %vm2327_vm3, %v2741_v7 }
 0x326   : > { %v2750_v14 = vmax.f32 %v2718_v45, 0.0  ;;  %v2751_v39 = vmax.f32 %v2719_v31, 0.0  ;;  %v2752_v59 = vmax.f32 %v2720_v26, 0.0  ;;  %v2753_v8 = vmax.f32 %v2721_v16, 0.0  ;;  %2774 = vst.msk [vmem:[%s4881_s9 + $0x10] sm:$0xff] %vm2327_vm3, %v2742_v63  ;;  %2775 = vst.msk [vmem:[%s4881_s9 + $0x18] sm:$0xff] %vm2327_vm3, %v2743_v41 }
 0x327   : > { %2776 = vst.msk [vmem:[%s4881_s9 + $0x20] sm:$0xff] %vm2327_vm3, %v2744_v23  ;;  %2777 = vst.msk [vmem:[%s4881_s9 + $0x28] sm:$0xff] %vm2327_vm3, %v2745_v11  ;;  %v2754_v57 = vmax.f32 %v2722_v2, 0.0  ;;  %v2755_v13 = vmax.f32 %v2723_v50, 0.0  ;;  %v2756_v4 = vmax.f32 %v2724_v3, 0.0  ;;  %v2757_v12 = vmax.f32 %v2725_v20, 0.0 }
 0x328   : > { %2778 = vst.msk [vmem:[%s4881_s9 + $0x30] sm:$0xff] %vm2327_vm3, %v2746_v38  ;;  %2779 = vst.msk [vmem:[%s4881_s9 + $0x38] sm:$0xff] %vm2327_vm3, %v2747_v58  ;;  %v2758_v43 = vmax.f32 %v4853_v49, 0.0  ;;  %v2759_v53 = vmax.f32 %v4855_v42, 0.0  ;;  %v2760_v47 = vmax.f32 %v4857_v25, 0.0  ;;  %v2761_v22 = vmax.f32 %v4859_v44, 0.0 }
 0x329   : > { %2780 = vst.msk [vmem:[%s4881_s9 + $0x40] sm:$0xff] %vm2327_vm3, %v2748_v37  ;;  %2781 = vst.msk [vmem:[%s4881_s9 + $0x48] sm:$0xff] %vm2327_vm3, %v2749_v54  ;;  %v2762_v28 = vmax.f32 %v4861_v27, 0.0  ;;  %v2763_v30 = vmax.f32 %v4863_v29, 0.0  ;;  %v2764_v55 = vmax.f32 %v4865_v33, 0.0  ;;  %v2765_v60 = vmax.f32 %v4867_v48, 0.0 }
 0x32a   : > { %2782 = vst.msk [vmem:[%s4881_s9 + $0x50] sm:$0xff] %vm2327_vm3, %v2750_v14  ;;  %2783 = vst.msk [vmem:[%s4881_s9 + $0x58] sm:$0xff] %vm2327_vm3, %v2751_v39  ;;  %v2766_v21 = vmax.f32 %v4869_v5, 0.0  ;;  %v2767_v1 = vmax.f32 %v4871_v6, 0.0  ;;  %v2768_v46 = vmax.f32 %v4873_v34, 0.0  ;;  %v2769_v10 = vmax.f32 %v4875_v36, 0.0 }
 0x32b   : > { %2784 = vst.msk [vmem:[%s4881_s9 + $0x60] sm:$0xff] %vm2327_vm3, %v2752_v59  ;;  %2785 = vst.msk [vmem:[%s4881_s9 + $0x68] sm:$0xff] %vm2327_vm3, %v2753_v8  ;;  %v2770_v9 = vmax.f32 %v4877_v24, 0.0  ;;  %v2771_v35 = vmax.f32 %v4879_v52, 0.0 }
 0x32c   : > { %2786 = vst.msk [vmem:[%s4881_s9 + $0x70] sm:$0xff] %vm2327_vm3, %v2754_v57  ;;  %2787 = vst.msk [vmem:[%s4881_s9 + $0x78] sm:$0xff] %vm2327_vm3, %v2755_v13 }
 0x32d   : > { %2788 = vst.msk [vmem:[%s4881_s9 + $0x80] sm:$0xff] %vm2327_vm3, %v2756_v4  ;;  %2789 = vst.msk [vmem:[%s4881_s9 + $0x88] sm:$0xff] %vm2327_vm3, %v2757_v12 }
 0x32e   : > { %2790 = vst.msk [vmem:[%s4881_s9 + $0x90] sm:$0xff] %vm2327_vm3, %v2758_v43  ;;  %2791 = vst.msk [vmem:[%s4881_s9 + $0x98] sm:$0xff] %vm2327_vm3, %v2759_v53 }
 0x32f   : > { %2792 = vst.msk [vmem:[%s4881_s9 + $0xa0] sm:$0xff] %vm2327_vm3, %v2760_v47  ;;  %2793 = vst.msk [vmem:[%s4881_s9 + $0xa8] sm:$0xff] %vm2327_vm3, %v2761_v22 }
 0x330   : > { %2794 = vst.msk [vmem:[%s4881_s9 + $0xb0] sm:$0xff] %vm2327_vm3, %v2762_v28  ;;  %2795 = vst.msk [vmem:[%s4881_s9 + $0xb8] sm:$0xff] %vm2327_vm3, %v2763_v30 }
 0x331   : > { %2796 = vst.msk [vmem:[%s4881_s9 + $0xc0] sm:$0xff] %vm2327_vm3, %v2764_v55  ;;  %2797 = vst.msk [vmem:[%s4881_s9 + $0xc8] sm:$0xff] %vm2327_vm3, %v2765_v60 }
 0x332   : > { %2798 = vst.msk [vmem:[%s4881_s9 + $0xd0] sm:$0xff] %vm2327_vm3, %v2766_v21  ;;  %2799 = vst.msk [vmem:[%s4881_s9 + $0xd8] sm:$0xff] %vm2327_vm3, %v2767_v1 }
 0x333   : > { %2800 = vst.msk [vmem:[%s4881_s9 + $0xe0] sm:$0xff] %vm2327_vm3, %v2768_v46  ;;  %2801 = vst.msk [vmem:[%s4881_s9 + $0xe8] sm:$0xff] %vm2327_vm3, %v2769_v10 }
 0x334   : > { %2802 = vst.msk [vmem:[%s4881_s9 + $0xf0] sm:$0xff] %vm2327_vm3, %v2770_v9  ;;  %2803 = vst.msk [vmem:[%s4881_s9 + $0xf8] sm:$0xff] %vm2327_vm3, %v2771_v35 }
 0x335   : > { %3100 = shalt.err (!%p3097_p3)
}
 0x336   : > { %s3101_s22 = scalar_lea.hbm %s4944_s16, 4096  ;;  %s3105_s8 = scalar_lea.hbm %s5020_s7, 8192 }
 0x337   : > { %p3102_p4 = scmp.ne.s32.totalorder %s4944_s16, %s3101_s22  ;;  %p3106_p9 = scmp.lt.u32.totalorder %s4944_s16, %s5020_s7 }
 0x338   : > { %p3107_p10 = scmp.lt.u32.totalorder %s3105_s8, %s3101_s22  ;;  %p3109_p12 = scmp.lt.u32.totalorder %s3101_s22, %s4944_s16 }
 0x339   : > { %p3103_p7 = pnand %p3102_p4, %p3235_p5 }
 0x33a   : > { %p3108_p11 = por %p3107_p10, %p3106_p9 }
 0x33b   : > { %p3104_p8 = pneg %p3103_p7 }
 0x33c   : > { %p3110_p13 = por %p3109_p12, %p3108_p11 }
 0x33e   : > { %p3111_p0 = pnand %p3110_p13, %p3104_p8 }
 0x340   : > { %3114 = shalt.err (!%p3111_p0)
}
 0x341   : > { %s3155_s28 = smov 128   ;;  %s3156_s15 = smov 8  }
 0x342   : > { %3039 = dma.vmem_to_hbm [thread:$0]  (%p3235_p5), %s4946_s14, 4096, %s4944_s16, %s4972_s17, %s3155_s28, %s3155_s28, %s3156_s15  }
 0x343 PF: > { %p3045_p1 = scmp.ge.s32.totalorder %s3149_s27, 2  ;;  %s2833_s18 = sand.u32 1, %s3137_s24  }
 0x344   : > { %s2834_s19 = scalar_lea.sflag [#allocation3], %s2833_s18 }
 0x345   : > { %p3042_p2 = pnand %p3045_p1, %p3239_p6 }
 0x347   : > { %3132 = dma.done.wait (!%p3042_p2), %s2834_s19, 4096  }
 0x348   : > { %3134 = vsyncadd (!%p3042_p2), %s2834_s19, 4294963200  ;;  %p17_p3 = scmp.ge.s32.totalorder %s3222_s30, 4   ;;  %s5023_s24 = smov %s3141_s25 }
 0x349   : > { %s5024_s25 = smov %s3145_s26  ;;  %s5025_s26 = smov %s3233_s10 }
 0x34a   : > { %s5026_s27 = smov %s3222_s30  ;;  %19 = sbr.rel (!%p17_p3) target bundleno = 3 (0x3), region = 83 }
 0x351   :  { %2839 = vsyncpa [#allocation3], 1 }
 0x352   :  { %2841 = vsyncpa [#allocation3 + $0x1], 1 }

</bundles_post_ra>
